<compile_context>
chip_gen: v7x
topology: tpu7x:2x2x1
jax: 0.10.0
libtpu: 0.0.40
codegen_flags: <defaults>
</compile_context>

<pallas_src>
import jax
import jax.numpy as jnp
from jax.experimental import pallas as pl
from jax.experimental.pallas import tpu as pltpu

EPS = 1e-5


def _fused_kernel(x_ref, gate_ref, w_ref, gamma_ref, beta_ref, o_ref):
    # Per grid step (Ct = Cout tile, P = H*W, N == 1):
    #   x_ref    : (Cin, P)   activations            (resident across steps)
    #   gate_ref : (1, Cin)   pre-sigmoid SE gate    (resident across steps)
    #   w_ref    : (Ct, Cin)  1x1 conv weight tile
    #   gamma_ref: (Ct, 1)    BN scale tile
    #   beta_ref : (Ct, 1)    BN shift tile
    #   o_ref    : (Ct, P)    output tile

    # Fold the SE gate into the conv weight (tiny (Ct, Cin) VPU pass; the
    # sigmoid runs on the EUP, effectively free).
    wg = w_ref[...] * jax.nn.sigmoid(gate_ref[...])                    # (Ct, Cin)

    # 1x1 conv == single MXU matmul; x streams straight into the MXU.
    # f32 operands kept for 1e-3 parity with the f32 reference (see header).
    y = jnp.dot(wg, x_ref[...], preferred_element_type=jnp.float32)    # (Ct, P)

    # Training-mode batch statistics over (N, H, W) == lane axis, two-pass.
    inv_p = 1.0 / y.shape[1]
    mean = jnp.sum(y, axis=1, keepdims=True) * inv_p                    # (Ct, 1)
    centered = y - mean
    var = jnp.sum(centered * centered, axis=1, keepdims=True) * inv_p   # biased var

    # Fold BN affine into one scale + shift on the centered values.
    scale = gamma_ref[...] * jax.lax.rsqrt(var + EPS)                   # (Ct, 1)
    o_ref[...] = (centered * scale + beta_ref[...]).astype(o_ref.dtype)


def _num_cout_tiles():
    """Split Cout across TensorCores only on 2-TC chips (v7x)."""
    try:
        kind = jax.devices()[0].device_kind.lower()
    except Exception:  # pragma: no cover - defensive, detection is best-effort
        return 1
    return 2 if ("v7" in kind or "7x" in kind) else 1


def sigmoid_mul_conv_bn(x255, x259, w, gamma, beta):
    """x255: (N, Cin, H, W), x259: (N, Cin, 1, 1), w: (Cout, Cin, 1, 1)."""
    N, Cin, H, W = x255.shape
    Cout = w.shape[0]
    P = H * W

    # Gate-into-weight folding is only valid when the SE gate is shared across
    # the batch, i.e. N == 1 (which is what this module uses).
    assert N == 1, "this fused kernel assumes batch size 1 (per-sample SE gate)"

    # Pure reshapes only (N == 1), no transposes -> no wrapper copies.
    x2d = x255.reshape(Cin, P)
    gate2d = x259.reshape(1, Cin)
    w2d = w.reshape(Cout, Cin)
    gamma2d = gamma.reshape(Cout, 1)
    beta2d = beta.reshape(Cout, 1)

    n_ct = _num_cout_tiles()
    if Cout % n_ct != 0 or (Cout // n_ct) % 8 != 0:
        n_ct = 1  # fall back to a single tile if the split violates (8,128) tiling
    ct = Cout // n_ct

    # Advisory cost for XLA's scheduler (matmul + BN epilogue; sigmoid/rsqrt
    # counted as transcendentals).
    flops = 2 * Cout * Cin * P + 8 * Cout * P
    bytes_accessed = 4 * (Cin * P + Cout * Cin + Cin + 2 * Cout + Cout * P)
    transcendentals = Cin * n_ct + Cout

    out2d = pl.pallas_call(
        _fused_kernel,
        out_shape=jax.ShapeDtypeStruct((Cout, P), x255.dtype),
        grid=(n_ct,),
        in_specs=[
            pl.BlockSpec((Cin, P), lambda c: (0, 0)),     # x: resident across steps
            pl.BlockSpec((1, Cin), lambda c: (0, 0)),     # gate: resident
            pl.BlockSpec((ct, Cin), lambda c: (c, 0)),    # w: Cout-tiled
            pl.BlockSpec((ct, 1), lambda c: (c, 0)),      # gamma
            pl.BlockSpec((ct, 1), lambda c: (c, 0)),      # beta
        ],
        out_specs=pl.BlockSpec((ct, P), lambda c: (c, 0)),
        compiler_params=pltpu.CompilerParams(
            dimension_semantics=("parallel",),
        ),
        cost_estimate=pl.CostEstimate(
            flops=flops,
            transcendentals=transcendentals,
            bytes_accessed=bytes_accessed,
        ),
    )(x2d, gate2d, w2d, gamma2d, beta2d)

    return out2d.reshape(1, Cout, H, W)


def _reference(x255, x259, w, gamma, beta):
    """Pure-JAX reference mirroring the PyTorch forward (training-mode BN)."""
    g = jax.nn.sigmoid(x259)
    xg = x255 * g
    y = jnp.einsum("nchw,oc->nohw", xg, w.reshape(w.shape[0], w.shape[1]))
    mean = jnp.mean(y, axis=(0, 2, 3), keepdims=True)
    var = jnp.mean((y - mean) ** 2, axis=(0, 2, 3), keepdims=True)
    return (y - mean) * jax.lax.rsqrt(var + EPS) * gamma.reshape(1, -1, 1, 1) \
        + beta.reshape(1, -1, 1, 1)


if __name__ == "__main__":
    key = jax.random.PRNGKey(0)
    k1, k2, k3, k4, k5 = jax.random.split(key, 5)

    # Cin/Cout are fixed by the module's Conv2d(960, 160); spatial is already small.
    N, Cin, Cout, H, W = 1, 960, 160, 14, 14

    x255 = jax.random.normal(k1, (N, Cin, H, W), dtype=jnp.float32)
    x259 = jax.random.normal(k2, (N, Cin, 1, 1), dtype=jnp.float32)

    # Deterministic parameter init (synthetic, no checkpoint).
    w = jax.random.normal(k3, (Cout, Cin, 1, 1), dtype=jnp.float32) * 0.02
    gamma = 1.0 + 0.1 * jax.random.normal(k4, (Cout,), dtype=jnp.float32)
    beta = 0.1 * jax.random.normal(k5, (Cout,), dtype=jnp.float32)

    out = sigmoid_mul_conv_bn(x255, x259, w, gamma, beta)
    jax.block_until_ready(out)

    ref = _reference(x255, x259, w, gamma, beta)
    assert out.shape == (N, Cout, H, W)
    assert jnp.allclose(out, ref, atol=1e-3, rtol=1e-3), "mismatch vs reference"

    # TODO(synk): BatchNorm's running_mean/running_var in-place update (training
    # side effect) is not materialized; the returned tensor does not depend on it.

    print("KERNEL_OK")
</pallas_src>

<mosaic_0001>
module attributes {stable_mosaic.version = 11 : i64} {
  func.func @_fused_kernel(%arg0: i32, %arg1: memref<960x196xf32, #tpu.memory_space<vmem>>, %arg2: memref<1x960xf32, #tpu.memory_space<vmem>>, %arg3: memref<160x960xf32, #tpu.memory_space<vmem>>, %arg4: memref<160x1xf32, #tpu.memory_space<vmem>>, %arg5: memref<160x1xf32, #tpu.memory_space<vmem>>, %arg6: memref<160x196xf32, #tpu.memory_space<vmem>>) attributes {dimension_semantics = [#tpu.dimension_semantics<parallel>], iteration_bounds = array<i64: 1>, scalar_prefetch = 0 : i64, scratch_operands = 0 : i64, tpu.core_type = #tpu.core_type<tc>, window_params = [{pipeline_mode = #tpu.pipeline_mode<synchronous>, transform_indices = @transform_0, window_bounds = array<i64: 960, 196>}, {pipeline_mode = #tpu.pipeline_mode<synchronous>, transform_indices = @transform_1, window_bounds = array<i64: 1, 960>}, {transform_indices = @transform_2, window_bounds = array<i64: 160, 960>}, {transform_indices = @transform_3, window_bounds = array<i64: 160, 1>}, {transform_indices = @transform_4, window_bounds = array<i64: 160, 1>}, {transform_indices = @transform_5, window_bounds = array<i64: 160, 196>}]} {
    %c0 = arith.constant 0 : index
    %c0_0 = arith.constant 0 : index
    %0 = vector.load %arg3[%c0, %c0_0] : memref<160x960xf32, #tpu.memory_space<vmem>>, vector<160x960xf32>
    %c0_1 = arith.constant 0 : index
    %c0_2 = arith.constant 0 : index
    %1 = vector.load %arg2[%c0_1, %c0_2] : memref<1x960xf32, #tpu.memory_space<vmem>>, vector<1x960xf32>
    %2 = arith.negf %1 : vector<1x960xf32>
    %3 = math.exp %2 : vector<1x960xf32>
    %cst = arith.constant 1.000000e+00 : f32
    %4 = vector.broadcast %cst : f32 to vector<1x960xf32>
    %5 = arith.addf %4, %3 : vector<1x960xf32>
    %6 = arith.divf %4, %5 : vector<1x960xf32>
    %7 = vector.broadcast %6 : vector<1x960xf32> to vector<160x960xf32>
    %8 = arith.mulf %0, %7 : vector<160x960xf32>
    %c0_3 = arith.constant 0 : index
    %c0_4 = arith.constant 0 : index
    %9 = vector.load %arg1[%c0_3, %c0_4] : memref<960x196xf32, #tpu.memory_space<vmem>>, vector<960x196xf32>
    %cst_5 = arith.constant dense<0.000000e+00> : vector<160x196xf32>
    %10 = tpu.matmul %8, %9, %cst_5 {dimension_numbers = #tpu.dot_dimension_numbers<[1], [0], [0], [1], [0, 0, 1, 1], [], []>} : vector<160x960xf32>, vector<960x196xf32>, vector<160x196xf32> -> vector<160x196xf32>
    %cst_6 = arith.constant dense<0.000000e+00> : vector<160xf32>
    %11 = vector.multi_reduction <add>, %10, %cst_6 [1] : vector<160x196xf32> to vector<160xf32>
    %12 = vector.shape_cast %11 : vector<160xf32> to vector<160x1xf32>
    %cst_7 = arith.constant 0.00510204071 : f32
    %13 = vector.broadcast %cst_7 : f32 to vector<160x1xf32>
    %14 = arith.mulf %12, %13 : vector<160x1xf32>
    %15 = vector.broadcast %14 : vector<160x1xf32> to vector<160x196xf32>
    %16 = arith.subf %10, %15 : vector<160x196xf32>
    %17 = arith.mulf %16, %16 : vector<160x196xf32>
    %cst_8 = arith.constant dense<0.000000e+00> : vector<160xf32>
    %18 = vector.multi_reduction <add>, %17, %cst_8 [1] : vector<160x196xf32> to vector<160xf32>
    %19 = vector.shape_cast %18 : vector<160xf32> to vector<160x1xf32>
    %cst_9 = arith.constant 0.00510204071 : f32
    %20 = vector.broadcast %cst_9 : f32 to vector<160x1xf32>
    %21 = arith.mulf %19, %20 : vector<160x1xf32>
    %c0_10 = arith.constant 0 : index
    %c0_11 = arith.constant 0 : index
    %22 = vector.load %arg4[%c0_10, %c0_11] : memref<160x1xf32, #tpu.memory_space<vmem>>, vector<160x1xf32>
    %cst_12 = arith.constant 9.99999974E-6 : f32
    %23 = vector.broadcast %cst_12 : f32 to vector<160x1xf32>
    %24 = arith.addf %21, %23 : vector<160x1xf32>
    %25 = math.rsqrt %24 : vector<160x1xf32>
    %26 = arith.mulf %22, %25 : vector<160x1xf32>
    %27 = vector.broadcast %26 : vector<160x1xf32> to vector<160x196xf32>
    %28 = arith.mulf %16, %27 : vector<160x196xf32>
    %c0_13 = arith.constant 0 : index
    %c0_14 = arith.constant 0 : index
    %29 = vector.load %arg5[%c0_13, %c0_14] : memref<160x1xf32, #tpu.memory_space<vmem>>, vector<160x1xf32>
    %30 = vector.broadcast %29 : vector<160x1xf32> to vector<160x196xf32>
    %31 = arith.addf %28, %30 : vector<160x196xf32>
    %c0_15 = arith.constant 0 : index
    %c0_16 = arith.constant 0 : index
    %32 = vector.load %arg6[%c0_15, %c0_16] : memref<160x196xf32, #tpu.memory_space<vmem>>, vector<160x196xf32>
    tpu.vector_store %arg6[%c0_15, %c0_16], %31 {strides = array<i32>} : memref<160x196xf32, #tpu.memory_space<vmem>>, vector<160x196xf32>,
    return
  }
  func.func @transform_0(%arg0: i32) -> (i32, i32) {
    %c0_i32 = arith.constant 0 : i32
    %c0_i32_0 = arith.constant 0 : i32
    %c0_i32_1 = arith.constant 0 : i32
    return %c0_i32, %c0_i32_0 : i32, i32
  }
  func.func @transform_1(%arg0: i32) -> (i32, i32) {
    %c0_i32 = arith.constant 0 : i32
    %c0_i32_0 = arith.constant 0 : i32
    %c0_i32_1 = arith.constant 0 : i32
    return %c0_i32, %c0_i32_0 : i32, i32
  }
  func.func @transform_2(%arg0: i32) -> (i32, i32) {
    %c0_i32 = arith.constant 0 : i32
    %c0_i32_0 = arith.constant 0 : i32
    return %arg0, %c0_i32 : i32, i32
  }
  func.func @transform_3(%arg0: i32) -> (i32, i32) {
    %c0_i32 = arith.constant 0 : i32
    %c0_i32_0 = arith.constant 0 : i32
    return %arg0, %c0_i32 : i32, i32
  }
  func.func @transform_4(%arg0: i32) -> (i32, i32) {
    %c0_i32 = arith.constant 0 : i32
    %c0_i32_0 = arith.constant 0 : i32
    return %arg0, %c0_i32 : i32, i32
  }
  func.func @transform_5(%arg0: i32) -> (i32, i32) {
    %c0_i32 = arith.constant 0 : i32
    %c0_i32_0 = arith.constant 0 : i32
    return %arg0, %c0_i32 : i32, i32
  }
}

</mosaic_0001>

<bundles_post_ra>
// kernel: tpu_custom_call.1
= control target key start
LH: loop header
LB: loop body
LE: loop exit
PB: predicated region body
PF: predicated region fallthrough
CT: control target
= control target key end

     0   :  { %s4671_s0 = inlined_call_operand.vmem [shape: f32[960,196], index: 0, kind: input, shape index: {}]   ;;  %s4672_s1 = inlined_call_operand.vmem [shape: f32[1,960], index: 1, kind: input, shape index: {}]   ;;  %s4673_s2 = inlined_call_operand.vmem [shape: f32[160,960], index: 2, kind: input, shape index: {}]   ;;  %s4674_s3 = inlined_call_operand.vmem [shape: f32[160,1], index: 3, kind: input, shape index: {}]   ;;  %s4675_s4 = inlined_call_operand.vmem [shape: f32[160,1], index: 4, kind: input, shape index: {}]   ;;  %s4676_s5 = inlined_call_operand.hbm [shape: f32[160,196], index: 5, kind: output, shape index: {}]  }
   0x1   :  { %v390_v0 = vld [vmem:[%s4671_s0 + $0x8] sm:$0xff]  ;;  %v392_v1 = vld [vmem:[%s4671_s0 + $0x18] sm:$0xff]  ;;  %v389_v5 = vld [vmem:[%s4671_s0] sm:$0xff] }
   0x2   :  { %v518_v2 = vld [vmem:[%s4671_s0 + $0x408] sm:$0xff]  ;;  %v2168_v3 = vpack.c.bf16 %v392_v1, %v390_v0  ;;  %v520_v4 = vld [vmem:[%s4671_s0 + $0x418] sm:$0xff]  ;;  %v391_v6 = vld [vmem:[%s4671_s0 + $0x10] sm:$0xff] }
   0x3   :  { %v2296_v7 = vpack.c.bf16 %v520_v4, %v518_v2  ;;  %v2170_v8 = vpack.c.bf16 %v391_v6, %v389_v5  ;;  %v517_v9 = vld [vmem:[%s4671_s0 + $0x400] sm:$0xff]  ;;  %v519_v10 = vld [vmem:[%s4671_s0 + $0x410] sm:$0xff]  ;;  %v394_v11 = vld [vmem:[%s4671_s0 + $0x28] sm:$0xff] }
   0x4   :  { %2169 = vmatprep.subr.bf16.mxu1 %v2168_v3  ;;  %v2298_v12 = vpack.c.bf16 %v519_v10, %v517_v9  ;;  %v396_v13 = vld [vmem:[%s4671_s0 + $0x38] sm:$0xff]  ;;  %v522_v14 = vld [vmem:[%s4671_s0 + $0x428] sm:$0xff]  ;;  %v393_v18 = vld [vmem:[%s4671_s0 + $0x20] sm:$0xff] }
   0x5   :  { %v524_v15 = vld [vmem:[%s4671_s0 + $0x438] sm:$0xff]  ;;  %2297 = vmatprep.subr.bf16.mxu0 %v2296_v7  ;;  %2171 = vmatpush1.bf16.msra.mxu1 %v2170_v8  ;;  %v2172_v16 = vpack.c.bf16 %v396_v13, %v394_v11  ;;  %v395_v19 = vld [vmem:[%s4671_s0 + $0x30] sm:$0xff]  ;;  %v521_v20 = vld [vmem:[%s4671_s0 + $0x420] sm:$0xff] }
   0x6   :  { %v2300_v17 = vpack.c.bf16 %v524_v15, %v522_v14  ;;  %2299 = vmatpush1.bf16.msra.mxu0 %v2298_v12  ;;  %v2174_v21 = vpack.c.bf16 %v395_v19, %v393_v18  ;;  %v523_v22 = vld [vmem:[%s4671_s0 + $0x430] sm:$0xff]  ;;  %v398_v23 = vld [vmem:[%s4671_s0 + $0x48] sm:$0xff]  ;;  %v400_v24 = vld [vmem:[%s4671_s0 + $0x58] sm:$0xff] }
   0x7   :  { %2173 = vmatprep.subr.bf16.mxu1 %v2172_v16  ;;  %v2302_v25 = vpack.c.bf16 %v523_v22, %v521_v20  ;;  %v2176_v26 = vpack.c.bf16 %v400_v24, %v398_v23  ;;  %v526_v27 = vld [vmem:[%s4671_s0 + $0x448] sm:$0xff]  ;;  %v528_v28 = vld [vmem:[%s4671_s0 + $0x458] sm:$0xff]  ;;  %v397_v29 = vld [vmem:[%s4671_s0 + $0x40] sm:$0xff] }
   0x8   :  { %2301 = vmatprep.subr.bf16.mxu0 %v2300_v17  ;;  %v2304_v30 = vpack.c.bf16 %v528_v28, %v526_v27  ;;  %v399_v31 = vld [vmem:[%s4671_s0 + $0x50] sm:$0xff]  ;;  %v525_v32 = vld [vmem:[%s4671_s0 + $0x440] sm:$0xff]  ;;  %v402_v35 = vld [vmem:[%s4671_s0 + $0x68] sm:$0xff] }
   0x9   :  { %v527_v33 = vld [vmem:[%s4671_s0 + $0x450] sm:$0xff]  ;;  %2175 = vmatpush1.bf16.msra.mxu1 %v2174_v21  ;;  %v2178_v34 = vpack.c.bf16 %v399_v31, %v397_v29  ;;  %v404_v36 = vld [vmem:[%s4671_s0 + $0x78] sm:$0xff]  ;;  %v530_v37 = vld [vmem:[%s4671_s0 + $0x468] sm:$0xff] }
   0xa   :  { %2303 = vmatpush1.bf16.msra.mxu0 %v2302_v25  ;;  %2177 = vmatprep.subr.bf16.mxu1 %v2176_v26  ;;  %v2306_v38 = vpack.c.bf16 %v527_v33, %v525_v32  ;;  %v2180_v39 = vpack.c.bf16 %v404_v36, %v402_v35  ;;  %v532_v40 = vld [vmem:[%s4671_s0 + $0x478] sm:$0xff]  ;;  %v401_v41 = vld [vmem:[%s4671_s0 + $0x60] sm:$0xff]  ;;  %v403_v42 = vld [vmem:[%s4671_s0 + $0x70] sm:$0xff] }
   0xb   :  { %2305 = vmatprep.subr.bf16.mxu0 %v2304_v30  ;;  %v2308_v43 = vpack.c.bf16 %v532_v40, %v530_v37  ;;  %v529_v44 = vld [vmem:[%s4671_s0 + $0x460] sm:$0xff]  ;;  %v531_v45 = vld [vmem:[%s4671_s0 + $0x470] sm:$0xff]  ;;  %v406_v46 = vld [vmem:[%s4671_s0 + $0x88] sm:$0xff]  ;;  %v2182_v50 = vpack.c.bf16 %v403_v42, %v401_v41 }
   0xc   :  { %v408_v47 = vld [vmem:[%s4671_s0 + $0x98] sm:$0xff]  ;;  %v534_v48 = vld [vmem:[%s4671_s0 + $0x488] sm:$0xff]  ;;  %v2310_v51 = vpack.c.bf16 %v531_v45, %v529_v44  ;;  %v405_v53 = vld [vmem:[%s4671_s0 + $0x80] sm:$0xff] }
   0xd   :  { %v536_v49 = vld [vmem:[%s4671_s0 + $0x498] sm:$0xff]  ;;  %2179 = vmatpush1.bf16.msra.mxu1 %v2178_v34  ;;  %v2184_v52 = vpack.c.bf16 %v408_v47, %v406_v46  ;;  %v407_v54 = vld [vmem:[%s4671_s0 + $0x90] sm:$0xff]  ;;  %v533_v55 = vld [vmem:[%s4671_s0 + $0x480] sm:$0xff] }
   0xe   :  { %2307 = vmatpush1.bf16.msra.mxu0 %v2306_v38  ;;  %2181 = vmatprep.subr.bf16.mxu1 %v2180_v39  ;;  %v2312_v56 = vpack.c.bf16 %v536_v49, %v534_v48  ;;  %v535_v57 = vld [vmem:[%s4671_s0 + $0x490] sm:$0xff]  ;;  %v410_v58 = vld [vmem:[%s4671_s0 + $0xa8] sm:$0xff]  ;;  %v412_v59 = vld [vmem:[%s4671_s0 + $0xb8] sm:$0xff]  ;;  %v2186_v62 = vpack.c.bf16 %v407_v54, %v405_v53 }
   0xf   :  { %2309 = vmatprep.subr.bf16.mxu0 %v2308_v43  ;;  %v538_v60 = vld [vmem:[%s4671_s0 + $0x4a8] sm:$0xff]  ;;  %v540_v61 = vld [vmem:[%s4671_s0 + $0x4b8] sm:$0xff]  ;;  %v2314_v63 = vpack.c.bf16 %v535_v57, %v533_v55  ;;  %v2188_v0 = vpack.c.bf16 %v412_v59, %v410_v58  ;;  %v409_v1 = vld [vmem:[%s4671_s0 + $0xa0] sm:$0xff] }
  0x10   :  { %v411_v2 = vld [vmem:[%s4671_s0 + $0xb0] sm:$0xff]  ;;  %v537_v3 = vld [vmem:[%s4671_s0 + $0x4a0] sm:$0xff]  ;;  %v2316_v4 = vpack.c.bf16 %v540_v61, %v538_v60  ;;  %v414_v6 = vld [vmem:[%s4671_s0 + $0xc8] sm:$0xff] }
  0x11   :  { %2183 = vmatpush1.bf16.msra.mxu1 %v2182_v50  ;;  %v539_v5 = vld [vmem:[%s4671_s0 + $0x4b0] sm:$0xff]  ;;  %v416_v7 = vld [vmem:[%s4671_s0 + $0xd8] sm:$0xff]  ;;  %v542_v8 = vld [vmem:[%s4671_s0 + $0x4c8] sm:$0xff]  ;;  %v2190_v10 = vpack.c.bf16 %v411_v2, %v409_v1 }
  0x12   :  { %2311 = vmatpush1.bf16.msra.mxu0 %v2310_v51  ;;  %2185 = vmatprep.subr.bf16.mxu1 %v2184_v52  ;;  %v544_v9 = vld [vmem:[%s4671_s0 + $0x4d8] sm:$0xff]  ;;  %v2318_v11 = vpack.c.bf16 %v539_v5, %v537_v3  ;;  %v2192_v12 = vpack.c.bf16 %v416_v7, %v414_v6  ;;  %v413_v13 = vld [vmem:[%s4671_s0 + $0xc0] sm:$0xff]  ;;  %v415_v14 = vld [vmem:[%s4671_s0 + $0xd0] sm:$0xff] }
  0x13   :  { %2313 = vmatprep.subr.bf16.mxu0 %v2312_v56  ;;  %v541_v15 = vld [vmem:[%s4671_s0 + $0x4c0] sm:$0xff]  ;;  %v2320_v16 = vpack.c.bf16 %v544_v9, %v542_v8  ;;  %v543_v17 = vld [vmem:[%s4671_s0 + $0x4d0] sm:$0xff]  ;;  %v418_v18 = vld [vmem:[%s4671_s0 + $0xe8] sm:$0xff]  ;;  %v2194_v22 = vpack.c.bf16 %v415_v14, %v413_v13 }
  0x14   :  { %v420_v19 = vld [vmem:[%s4671_s0 + $0xf8] sm:$0xff]  ;;  %v546_v20 = vld [vmem:[%s4671_s0 + $0x4e8] sm:$0xff]  ;;  %v2322_v23 = vpack.c.bf16 %v543_v17, %v541_v15  ;;  %v417_v25 = vld [vmem:[%s4671_s0 + $0xe0] sm:$0xff] }
  0x15   :  { %2187 = vmatpush1.bf16.msra.mxu1 %v2186_v62  ;;  %v548_v21 = vld [vmem:[%s4671_s0 + $0x4f8] sm:$0xff]  ;;  %v2196_v24 = vpack.c.bf16 %v420_v19, %v418_v18  ;;  %v419_v26 = vld [vmem:[%s4671_s0 + $0xf0] sm:$0xff]  ;;  %v545_v27 = vld [vmem:[%s4671_s0 + $0x4e0] sm:$0xff] }
  0x16   :  { %2315 = vmatpush1.bf16.msra.mxu0 %v2314_v63  ;;  %2189 = vmatprep.subr.bf16.mxu1 %v2188_v0  ;;  %v2324_v28 = vpack.c.bf16 %v548_v21, %v546_v20  ;;  %v547_v29 = vld [vmem:[%s4671_s0 + $0x4f0] sm:$0xff]  ;;  %v422_v30 = vld [vmem:[%s4671_s0 + $0x108] sm:$0xff]  ;;  %v424_v31 = vld [vmem:[%s4671_s0 + $0x118] sm:$0xff]  ;;  %v2198_v34 = vpack.c.bf16 %v419_v26, %v417_v25 }
  0x17   :  { %2317 = vmatprep.subr.bf16.mxu0 %v2316_v4  ;;  %v550_v32 = vld [vmem:[%s4671_s0 + $0x508] sm:$0xff]  ;;  %v552_v33 = vld [vmem:[%s4671_s0 + $0x518] sm:$0xff]  ;;  %v2326_v35 = vpack.c.bf16 %v547_v29, %v545_v27  ;;  %v2200_v36 = vpack.c.bf16 %v424_v31, %v422_v30  ;;  %v421_v37 = vld [vmem:[%s4671_s0 + $0x100] sm:$0xff] }
  0x18   :  { %v423_v38 = vld [vmem:[%s4671_s0 + $0x110] sm:$0xff]  ;;  %v549_v39 = vld [vmem:[%s4671_s0 + $0x500] sm:$0xff]  ;;  %v2328_v40 = vpack.c.bf16 %v552_v33, %v550_v32  ;;  %v426_v42 = vld [vmem:[%s4671_s0 + $0x128] sm:$0xff] }
  0x19   :  { %2191 = vmatpush1.bf16.msra.mxu1 %v2190_v10  ;;  %v551_v41 = vld [vmem:[%s4671_s0 + $0x510] sm:$0xff]  ;;  %v428_v43 = vld [vmem:[%s4671_s0 + $0x138] sm:$0xff]  ;;  %v554_v44 = vld [vmem:[%s4671_s0 + $0x528] sm:$0xff]  ;;  %v2202_v46 = vpack.c.bf16 %v423_v38, %v421_v37 }
  0x1a   :  { %2319 = vmatpush1.bf16.msra.mxu0 %v2318_v11  ;;  %2193 = vmatprep.subr.bf16.mxu1 %v2192_v12  ;;  %v556_v45 = vld [vmem:[%s4671_s0 + $0x538] sm:$0xff]  ;;  %v2330_v47 = vpack.c.bf16 %v551_v41, %v549_v39  ;;  %v2204_v48 = vpack.c.bf16 %v428_v43, %v426_v42  ;;  %v425_v49 = vld [vmem:[%s4671_s0 + $0x120] sm:$0xff]  ;;  %v427_v50 = vld [vmem:[%s4671_s0 + $0x130] sm:$0xff] }
  0x1b   :  { %2321 = vmatprep.subr.bf16.mxu0 %v2320_v16  ;;  %v553_v51 = vld [vmem:[%s4671_s0 + $0x520] sm:$0xff]  ;;  %v2332_v52 = vpack.c.bf16 %v556_v45, %v554_v44  ;;  %v555_v53 = vld [vmem:[%s4671_s0 + $0x530] sm:$0xff]  ;;  %v430_v54 = vld [vmem:[%s4671_s0 + $0x148] sm:$0xff]  ;;  %v2206_v58 = vpack.c.bf16 %v427_v50, %v425_v49 }
  0x1c   :  { %v432_v55 = vld [vmem:[%s4671_s0 + $0x158] sm:$0xff]  ;;  %v558_v56 = vld [vmem:[%s4671_s0 + $0x548] sm:$0xff]  ;;  %v2334_v59 = vpack.c.bf16 %v555_v53, %v553_v51  ;;  %v429_v61 = vld [vmem:[%s4671_s0 + $0x140] sm:$0xff] }
  0x1d   :  { %2195 = vmatpush1.bf16.msra.mxu1 %v2194_v22  ;;  %v560_v57 = vld [vmem:[%s4671_s0 + $0x558] sm:$0xff]  ;;  %v2208_v60 = vpack.c.bf16 %v432_v55, %v430_v54  ;;  %v431_v62 = vld [vmem:[%s4671_s0 + $0x150] sm:$0xff]  ;;  %v557_v63 = vld [vmem:[%s4671_s0 + $0x540] sm:$0xff] }
  0x1e   :  { %2323 = vmatpush1.bf16.msra.mxu0 %v2322_v23  ;;  %2197 = vmatprep.subr.bf16.mxu1 %v2196_v24  ;;  %v2336_v0 = vpack.c.bf16 %v560_v57, %v558_v56  ;;  %v559_v1 = vld [vmem:[%s4671_s0 + $0x550] sm:$0xff]  ;;  %v434_v2 = vld [vmem:[%s4671_s0 + $0x168] sm:$0xff]  ;;  %v436_v3 = vld [vmem:[%s4671_s0 + $0x178] sm:$0xff]  ;;  %v2210_v6 = vpack.c.bf16 %v431_v62, %v429_v61 }
  0x1f   :  { %2325 = vmatprep.subr.bf16.mxu0 %v2324_v28  ;;  %v562_v4 = vld [vmem:[%s4671_s0 + $0x568] sm:$0xff]  ;;  %v564_v5 = vld [vmem:[%s4671_s0 + $0x578] sm:$0xff]  ;;  %v2338_v7 = vpack.c.bf16 %v559_v1, %v557_v63  ;;  %v2212_v8 = vpack.c.bf16 %v436_v3, %v434_v2  ;;  %v433_v9 = vld [vmem:[%s4671_s0 + $0x160] sm:$0xff]  ;;  %v189_v2 = vlaneseq }
  0x20   :  { %v435_v10 = vld [vmem:[%s4671_s0 + $0x170] sm:$0xff]  ;;  %v561_v11 = vld [vmem:[%s4671_s0 + $0x560] sm:$0xff]  ;;  %v2340_v12 = vpack.c.bf16 %v564_v5, %v562_v4  ;;  %v438_v14 = vld [vmem:[%s4671_s0 + $0x188] sm:$0xff] }
  0x21   :  { %2199 = vmatpush1.bf16.msra.mxu1 %v2198_v34  ;;  %v563_v13 = vld [vmem:[%s4671_s0 + $0x570] sm:$0xff]  ;;  %v440_v15 = vld [vmem:[%s4671_s0 + $0x198] sm:$0xff]  ;;  %v566_v16 = vld [vmem:[%s4671_s0 + $0x588] sm:$0xff]  ;;  %v2214_v19 = vpack.c.bf16 %v435_v10, %v433_v9  ;;  %v3035_v10 = vshrl.u32 %v189_v2, 7 }
  0x22   :  { %2327 = vmatpush1.bf16.msra.mxu0 %v2326_v35  ;;  %2201 = vmatprep.subr.bf16.mxu1 %v2200_v36  ;;  %v568_v17 = vld [vmem:[%s4671_s0 + $0x598] sm:$0xff]  ;;  %v181_v18 = vld [vmem:[%s4672_s1] sm:$0xff]  ;;  %v2342_v21 = vpack.c.bf16 %v563_v13, %v561_v11  ;;  %v2216_v22 = vpack.c.bf16 %v440_v15, %v438_v14  ;;  %v439_v24 = vld [vmem:[%s4671_s0 + $0x190] sm:$0xff] }
  0x23   :  { %2329 = vmatprep.subr.bf16.mxu0 %v2328_v40  ;;  %v2147_v20 = vmul.f32 -1.442695, %v181_v18  ;;  %v437_v23 = vld [vmem:[%s4671_s0 + $0x180] sm:$0xff]  ;;  %v2344_v26 = vpack.c.bf16 %v568_v17, %v566_v16  ;;  %v567_v27 = vld [vmem:[%s4671_s0 + $0x590] sm:$0xff]  ;;  %v442_v28 = vld [vmem:[%s4671_s0 + $0x1a8] sm:$0xff]  ;;  %v211_v13 = vsub.s32 5, %v3035_v10 }
  0x24   :  { %v565_v25 = vld [vmem:[%s4671_s0 + $0x580] sm:$0xff]  ;;  %v444_v29 = vld [vmem:[%s4671_s0 + $0x1b8] sm:$0xff]  ;;  %v570_v30 = vld [vmem:[%s4671_s0 + $0x5a8] sm:$0xff]  ;;  %v2218_v32 = vpack.c.bf16 %v439_v24, %v437_v23  ;;  %v191_v14 = vsub.s32 0, %v3035_v10  ;;  %v207_v15 = vsub.s32 4, %v3035_v10  ;;  %v203_v18 = vsub.s32 3, %v3035_v10 }
  0x25   :  { %2203 = vmatpush1.bf16.msra.mxu1 %v2202_v46  ;;  %2534 = vpow2.f32 %v2147_v20  ;;  %v572_v31 = vld [vmem:[%s4671_s0 + $0x5b8] sm:$0xff]  ;;  %v2346_v33 = vpack.c.bf16 %v567_v27, %v565_v25  ;;  %v2220_v34 = vpack.c.bf16 %v444_v29, %v442_v28  ;;  %v441_v35 = vld [vmem:[%s4671_s0 + $0x1a0] sm:$0xff]  ;;  %v443_v36 = vld [vmem:[%s4671_s0 + $0x1b0] sm:$0xff]  ;;  %v199_v20 = vsub.s32 2, %v3035_v10 }
  0x26   :  { %2331 = vmatpush1.bf16.msra.mxu0 %v2330_v47  ;;  %2205 = vmatprep.subr.bf16.mxu1 %v2204_v48  ;;  %v569_v37 = vld [vmem:[%s4671_s0 + $0x5a0] sm:$0xff]  ;;  %v2348_v38 = vpack.c.bf16 %v572_v31, %v570_v30  ;;  %v571_v39 = vld [vmem:[%s4671_s0 + $0x5b0] sm:$0xff]  ;;  %v446_v40 = vld [vmem:[%s4671_s0 + $0x1c8] sm:$0xff]  ;;  %v2222_v44 = vpack.c.bf16 %v443_v36, %v441_v35 }
  0x27   :  { %2333 = vmatprep.subr.bf16.mxu0 %v2332_v52  ;;  %v448_v41 = vld [vmem:[%s4671_s0 + $0x1d8] sm:$0xff]  ;;  %v574_v42 = vld [vmem:[%s4671_s0 + $0x5c8] sm:$0xff]  ;;  %v2350_v45 = vpack.c.bf16 %v571_v39, %v569_v37  ;;  %v445_v47 = vld [vmem:[%s4671_s0 + $0x1c0] sm:$0xff] }
  0x28   :  { %v576_v43 = vld [vmem:[%s4671_s0 + $0x5d8] sm:$0xff]  ;;  %v2224_v46 = vpack.c.bf16 %v448_v41, %v446_v40  ;;  %v447_v48 = vld [vmem:[%s4671_s0 + $0x1d0] sm:$0xff]  ;;  %v573_v49 = vld [vmem:[%s4671_s0 + $0x5c0] sm:$0xff] }
  0x29   :  { %2207 = vmatpush1.bf16.msra.mxu1 %v2206_v58  ;;  %v2352_v50 = vpack.c.bf16 %v576_v43, %v574_v42  ;;  %v575_v51 = vld [vmem:[%s4671_s0 + $0x5d0] sm:$0xff]  ;;  %v450_v52 = vld [vmem:[%s4671_s0 + $0x1e8] sm:$0xff]  ;;  %v452_v53 = vld [vmem:[%s4671_s0 + $0x1f8] sm:$0xff]  ;;  %v2226_v57 = vpack.c.bf16 %v447_v48, %v445_v47 }
  0x2a   :  { %2335 = vmatpush1.bf16.msra.mxu0 %v2334_v59  ;;  %2209 = vmatprep.subr.bf16.mxu1 %v2208_v60  ;;  %v578_v54 = vld [vmem:[%s4671_s0 + $0x5e8] sm:$0xff]  ;;  %v580_v55 = vld [vmem:[%s4671_s0 + $0x5f8] sm:$0xff]  ;;  %v2354_v58 = vpack.c.bf16 %v575_v51, %v573_v49  ;;  %v2228_v59 = vpack.c.bf16 %v452_v53, %v450_v52  ;;  %v449_v60 = vld [vmem:[%s4671_s0 + $0x1e0] sm:$0xff] }
  0x2b   :  { %2337 = vmatprep.subr.bf16.mxu0 %v2336_v0  ;;  %v451_v61 = vld [vmem:[%s4671_s0 + $0x1f0] sm:$0xff]  ;;  %v577_v62 = vld [vmem:[%s4671_s0 + $0x5e0] sm:$0xff]  ;;  %v2356_v0 = vpack.c.bf16 %v580_v55, %v578_v54  ;;  %v454_v3 = vld [vmem:[%s4671_s0 + $0x208] sm:$0xff] }
  0x2c   :  { %v579_v1 = vld [vmem:[%s4671_s0 + $0x5f0] sm:$0xff]  ;;  %v456_v4 = vld [vmem:[%s4671_s0 + $0x218] sm:$0xff]  ;;  %v582_v5 = vld [vmem:[%s4671_s0 + $0x608] sm:$0xff] }
  0x2d   :  { %2211 = vmatpush1.bf16.msra.mxu1 %v2210_v6  ;;  %v584_v6 = vld [vmem:[%s4671_s0 + $0x618] sm:$0xff]  ;;  %v2232_v9 = vpack.c.bf16 %v456_v4, %v454_v3  ;;  %v453_v16 = vld [vmem:[%s4671_s0 + $0x200] sm:$0xff]  ;;  %v455_v17 = vld [vmem:[%s4671_s0 + $0x210] sm:$0xff] }
  0x2e   :  { %2339 = vmatpush1.bf16.msra.mxu0 %v2338_v7  ;;  %2213 = vmatprep.subr.bf16.mxu1 %v2212_v8  ;;  %v2230_v7 = vpack.c.bf16 %v451_v61, %v449_v60  ;;  %v2358_v8 = vpack.c.bf16 %v579_v1, %v577_v62  ;;  %v2360_v11 = vpack.c.bf16 %v584_v6, %v582_v5  ;;  %v583_v23 = vld [vmem:[%s4671_s0 + $0x610] sm:$0xff]  ;;  %v26_v25 = vld [vmem:[%s4673_s2 + $0x28] sm:$0xff]  ;;  %v25_v27 = vld [vmem:[%s4673_s2 + $0x20] sm:$0xff] }
  0x2f   :  { %2341 = vmatprep.subr.bf16.mxu0 %v2340_v12  ;;  %v2535_v56 = vpop.eup %2534  ;;  %v195_v12 = vsub.s32 1, %v3035_v10  ;;  %v2234_v28 = vpack.c.bf16 %v455_v17, %v453_v16  ;;  %v458_v35 = vld [vmem:[%s4671_s0 + $0x228] sm:$0xff]  ;;  %v460_v37 = vld [vmem:[%s4671_s0 + $0x238] sm:$0xff]  ;;  %v29_v47 = vld [vmem:[%s4673_s2 + $0x40] sm:$0xff] }
  0x30   :  { %v185_v63 = vadd.f32 1.0, %v2535_v56  ;;  %v588_v39 = vld [vmem:[%s4671_s0 + $0x638] sm:$0xff]  ;;  %v33_v48 = vld [vmem:[%s4673_s2 + $0x60] sm:$0xff]  ;;  %v459_v52 = vld [vmem:[%s4671_s0 + $0x230] sm:$0xff]  ;;  %v2236_v55 = vpack.c.bf16 %v460_v37, %v458_v35 }
  0x31   :  { %2215 = vmatpush1.bf16.msra.mxu1 %v2214_v19  ;;  %v219_v19 = vsub.s32 7, %v3035_v10  ;;  %v457_v49 = vld [vmem:[%s4671_s0 + $0x220] sm:$0xff]  ;;  %v38_v53 = vld [vmem:[%s4673_s2 + $0x88] sm:$0xff]  ;;  %v464_v62 = vld [vmem:[%s4671_s0 + $0x258] sm:$0xff] }
  0x32   :  { %2343 = vmatpush1.bf16.msra.mxu0 %v2342_v21  ;;  %2217 = vmatprep.subr.bf16.mxu1 %v2216_v22  ;;  %2536 = vrcp.f32 %v185_v63  ;;  %v22_v21 = vld [vmem:[%s4673_s2 + $0x8] sm:$0xff]  ;;  %v581_v22 = vld [vmem:[%s4671_s0 + $0x600] sm:$0xff]  ;;  %v2238_v1 = vpack.c.bf16 %v459_v52, %v457_v49 }
  0x33   :  { %2345 = vmatprep.subr.bf16.mxu0 %v2344_v26  ;;  %v21_v26 = vld [vmem:[%s4673_s2] sm:$0xff]  ;;  %v2362_v36 = vpack.c.bf16 %v583_v23, %v581_v22  ;;  %v42_v54 = vld [vmem:[%s4673_s2 + $0xa8] sm:$0xff] }
  0x34   :  { %v590_v63 = vld [vmem:[%s4671_s0 + $0x648] sm:$0xff]  ;;  %v37_v3 = vld [vmem:[%s4673_s2 + $0x80] sm:$0xff] }
  0x35   :  { %2219 = vmatpush1.bf16.msra.mxu1 %v2218_v32  ;;  %v41_v4 = vld [vmem:[%s4673_s2 + $0xa0] sm:$0xff]  ;;  %v594_v37 = vld [vmem:[%s4671_s0 + $0x668] sm:$0xff] }
  0x36   :  { %2347 = vmatpush1.bf16.msra.mxu0 %v2346_v33  ;;  %2221 = vmatprep.subr.bf16.mxu1 %v2220_v34  ;;  %v30_v33 = vld [vmem:[%s4673_s2 + $0x48] sm:$0xff]  ;;  %v45_v22 = vld [vmem:[%s4673_s2 + $0xc0] sm:$0xff] }
  0x37   :  { %2349 = vmatprep.subr.bf16.mxu0 %v2348_v38  ;;  %v34_v34 = vld [vmem:[%s4673_s2 + $0x68] sm:$0xff]  ;;  %v49_v23 = vld [vmem:[%s4673_s2 + $0xe0] sm:$0xff] }
  0x38   :  { %v586_v38 = vld [vmem:[%s4671_s0 + $0x628] sm:$0xff]  ;;  %v53_v49 = vld [vmem:[%s4673_s2 + $0x100] sm:$0xff] }
  0x39   :  { %2223 = vmatpush1.bf16.msra.mxu1 %v2222_v44  ;;  %v2364_v56 = vpack.c.bf16 %v588_v39, %v586_v38  ;;  %v596_v38 = vld [vmem:[%s4671_s0 + $0x678] sm:$0xff] }
  0x3a   :  { %2351 = vmatpush1.bf16.msra.mxu0 %v2350_v45  ;;  %2225 = vmatprep.subr.bf16.mxu1 %v2224_v46 }
  0x3b   :  { %2353 = vmatprep.subr.bf16.mxu0 %v2352_v50 }
  0x3c   :  { %v3059_v24 = vpop.eup %2536 }
  0x3d   :  { %2227 = vmatpush1.bf16.msra.mxu1 %v2226_v57  ;;  %v3071_v29 = vrot.slane %v3059_v24, %v195_v12  ;;  %v3074_v30 = vrot.slane %v3059_v24, %v211_v13  ;;  %v3077_v31 = vrot.slane %v3059_v24, %v191_v14  ;;  %v3080_v32 = vrot.slane %v3059_v24, %v207_v15  ;;  %v585_v57 = vld [vmem:[%s4671_s0 + $0x620] sm:$0xff]  ;;  %v50_v12 = vld [vmem:[%s4673_s2 + $0xe8] sm:$0xff]  ;;  %v468_v15 = vld [vmem:[%s4671_s0 + $0x278] sm:$0xff] }
  0x3e   :  { %2355 = vmatpush1.bf16.msra.mxu0 %v2354_v58  ;;  %2229 = vmatprep.subr.bf16.mxu1 %v2228_v59  ;;  %v3101_v40 = vrot.slane %v3059_v24, %v203_v18  ;;  %v3104_v41 = vrot.slane %v3059_v24, %v219_v19  ;;  %v3107_v42 = vrot.slane %v3059_v24, %v199_v20  ;;  %v587_v58 = vld [vmem:[%s4671_s0 + $0x630] sm:$0xff]  ;;  %v462_v59 = vld [vmem:[%s4671_s0 + $0x248] sm:$0xff]  ;;  %v589_v18 = vld [vmem:[%s4671_s0 + $0x640] sm:$0xff] }
  0x3f   :  { %2357 = vmatprep.subr.bf16.mxu0 %v2356_v0  ;;  %v230_v43 = vmul.f32 %v3071_v29, %v22_v21  ;;  %v234_v44 = vmul.f32 %v3074_v30, %v26_v25  ;;  %v229_v45 = vmul.f32 %v3077_v31, %v21_v26  ;;  %v233_v46 = vmul.f32 %v3080_v32, %v25_v27  ;;  %v592_v0 = vld [vmem:[%s4671_s0 + $0x658] sm:$0xff]  ;;  %v466_v14 = vld [vmem:[%s4671_s0 + $0x268] sm:$0xff]  ;;  %v591_v19 = vld [vmem:[%s4671_s0 + $0x650] sm:$0xff] }
  0x40   :  { %v238_v50 = vmul.f32 %v3071_v29, %v30_v33  ;;  %v242_v51 = vmul.f32 %v3074_v30, %v34_v34  ;;  %v237_v60 = vmul.f32 %v3077_v31, %v29_v47  ;;  %v241_v61 = vmul.f32 %v3080_v32, %v33_v48  ;;  %v54_v25 = vld [vmem:[%s4673_s2 + $0x108] sm:$0xff]  ;;  %v465_v33 = vld [vmem:[%s4671_s0 + $0x260] sm:$0xff]  ;;  %v467_v34 = vld [vmem:[%s4671_s0 + $0x270] sm:$0xff] }
  0x41   :  { %2231 = vmatpush1.bf16.msra.mxu1 %v2230_v7  ;;  %754 = vmatprep.mubr.f32.mxu1 %v230_v43  ;;  %v246_v2 = vmul.f32 %v3071_v29, %v38_v53  ;;  %v250_v5 = vmul.f32 %v3074_v30, %v42_v54  ;;  %v2366_v6 = vpack.c.bf16 %v587_v58, %v585_v57  ;;  %v46_v7 = vld [vmem:[%s4673_s2 + $0xc8] sm:$0xff] }
  0x42   :  { %2359 = vmatpush1.bf16.msra.mxu0 %v2358_v8  ;;  %2233 = vmatprep.subr.bf16.mxu1 %v2232_v9  ;;  %v461_v8 = vld [vmem:[%s4671_s0 + $0x240] sm:$0xff]  ;;  %v463_v9 = vld [vmem:[%s4671_s0 + $0x250] sm:$0xff]  ;;  %v2368_v13 = vpack.c.bf16 %v592_v0, %v590_v63  ;;  %v245_v16 = vmul.f32 %v3077_v31, %v37_v3  ;;  %v249_v17 = vmul.f32 %v3080_v32, %v41_v4  ;;  %v66_v53 = vld [vmem:[%s4673_s2 + $0x168] sm:$0xff] }
  0x43   :  { %2361 = vmatprep.subr.bf16.mxu0 %v2360_v11  ;;  %1124 = vmatprep.mubr.f32.mxu0 %v234_v44  ;;  %v2240_v11 = vpack.c.bf16 %v464_v62, %v462_v59  ;;  %v254_v20 = vmul.f32 %v3071_v29, %v46_v7  ;;  %v2242_v21 = vpack.c.bf16 %v463_v9, %v461_v8  ;;  %v472_v44 = vld [vmem:[%s4671_s0 + $0x298] sm:$0xff]  ;;  %v474_v59 = vld [vmem:[%s4671_s0 + $0x2a8] sm:$0xff] }
  0x44   :  { %755 = vmatmul.mubr.f32.vlgmr.msra.gmra.mrb[0].mxu1 %v229_v45  ;;  %v258_v26 = vmul.f32 %v3074_v30, %v50_v12  ;;  %v2244_v27 = vpack.c.bf16 %v468_v15, %v466_v14  ;;  %v2370_v35 = vpack.c.bf16 %v591_v19, %v589_v18  ;;  %v253_v39 = vmul.f32 %v3077_v31, %v45_v22  ;;  %v593_v45 = vld [vmem:[%s4671_s0 + $0x660] sm:$0xff]  ;;  %v476_v0 = vld [vmem:[%s4671_s0 + $0x2b8] sm:$0xff]  ;;  %v70_v7 = vld [vmem:[%s4673_s2 + $0x188] sm:$0xff] }
  0x45   :  { %1125 = vmatmul.mubr.f32.vlgmr.msra.gmra.mrb[0].mxu0 %v233_v46  ;;  %2235 = vmatpush1.bf16.msra.mxu1 %v2234_v28  ;;  %v58_v28 = vld [vmem:[%s4673_s2 + $0x128] sm:$0xff]  ;;  %v257_v43 = vmul.f32 %v3080_v32, %v49_v23  ;;  %v595_v46 = vld [vmem:[%s4671_s0 + $0x670] sm:$0xff]  ;;  %v262_v47 = vmul.f32 %v3071_v29, %v54_v25  ;;  %v2246_v52 = vpack.c.bf16 %v467_v34, %v465_v33  ;;  %v604_v18 = vld [vmem:[%s4671_s0 + $0x6b8] sm:$0xff] }
  0x46   :  { %2363 = vmatpush1.bf16.msra.mxu0 %v2362_v36  ;;  %760 = vmatprep.mubr.f32.mxu1 %v238_v50  ;;  %v470_v36 = vld [vmem:[%s4671_s0 + $0x288] sm:$0xff]  ;;  %v266_v48 = vmul.f32 %v3074_v30, %v58_v28  ;;  %v57_v50 = vld [vmem:[%s4673_s2 + $0x120] sm:$0xff]  ;;  %v2372_v54 = vpack.c.bf16 %v596_v38, %v594_v37  ;;  %v2374_v58 = vpack.c.bf16 %v595_v46, %v593_v45  ;;  %v475_v12 = vld [vmem:[%s4671_s0 + $0x2b0] sm:$0xff] }
  0x47   :  { %1130 = vmatprep.mubr.f32.mxu0 %v242_v51  ;;  %2237 = vmatprep.subr.bf16.mxu1 %v2236_v55  ;;  %v62_v51 = vld [vmem:[%s4673_s2 + $0x148] sm:$0xff]  ;;  %v469_v55 = vld [vmem:[%s4671_s0 + $0x280] sm:$0xff]  ;;  %v2248_v57 = vpack.c.bf16 %v472_v44, %v470_v36  ;;  %v261_v62 = vmul.f32 %v3077_v31, %v53_v49  ;;  %v265_v63 = vmul.f32 %v3080_v32, %v57_v50  ;;  %v603_v23 = vld [vmem:[%s4671_s0 + $0x6b0] sm:$0xff] }
  0x48   :  { %2365 = vmatprep.subr.bf16.mxu0 %v2364_v56  ;;  %761 = vmatmul.mubr.f32.gmra.mrb[2].mxu1 %v237_v60  ;;  %v471_v56 = vld [vmem:[%s4671_s0 + $0x290] sm:$0xff]  ;;  %v598_v60 = vld [vmem:[%s4671_s0 + $0x688] sm:$0xff]  ;;  %v270_v3 = vmul.f32 %v3071_v29, %v62_v51  ;;  %v274_v4 = vmul.f32 %v3074_v30, %v66_v53  ;;  %v2252_v14 = vpack.c.bf16 %v476_v0, %v474_v59  ;;  %v601_v22 = vld [vmem:[%s4671_s0 + $0x6a0] sm:$0xff] }
  0x49   :  { %1131 = vmatmul.mubr.f32.gmra.mrb[2].mxu0 %v241_v61  ;;  %2239 = vmatpush1.bf16.msra.mxu1 %v2238_v1  ;;  %v600_v61 = vld [vmem:[%s4671_s0 + $0x698] sm:$0xff]  ;;  %v597_v1 = vld [vmem:[%s4671_s0 + $0x680] sm:$0xff]  ;;  %v2250_v8 = vpack.c.bf16 %v471_v56, %v469_v55  ;;  %v74_v9 = vld [vmem:[%s4673_s2 + $0x1a8] sm:$0xff]  ;;  %v278_v25 = vmul.f32 %v3071_v29, %v70_v7  ;;  %v2382_v44 = vpack.c.bf16 %v603_v23, %v601_v22 }
  0x4a   :  { %766 = vmatprep.mubr.f32.mxu1 %v246_v2  ;;  %1136 = vmatprep.mubr.f32.mxu0 %v250_v5  ;;  %v599_v2 = vld [vmem:[%s4671_s0 + $0x690] sm:$0xff]  ;;  %v61_v5 = vld [vmem:[%s4673_s2 + $0x140] sm:$0xff]  ;;  %v78_v33 = vld [vmem:[%s4673_s2 + $0x1c8] sm:$0xff] }
  0x4b   :  { %2367 = vmatpush1.bf16.msra.mxu0 %v2366_v6  ;;  %2241 = vmatprep.subr.bf16.mxu1 %v2240_v11  ;;  %v65_v6 = vld [vmem:[%s4673_s2 + $0x160] sm:$0xff]  ;;  %v2378_v15 = vpack.c.bf16 %v599_v2, %v597_v1  ;;  %v269_v19 = vmul.f32 %v3077_v31, %v61_v5  ;;  %v479_v37 = vld [vmem:[%s4671_s0 + $0x2d0] sm:$0xff]  ;;  %v606_v45 = vld [vmem:[%s4671_s0 + $0x6c8] sm:$0xff] }
  0x4c   :  { %2369 = vmatprep.subr.bf16.mxu0 %v2368_v13  ;;  %767 = vmatmul.mubr.f32.gmra.mrb[4].mxu1 %v245_v16  ;;  %v473_v11 = vld [vmem:[%s4671_s0 + $0x2a0] sm:$0xff]  ;;  %v2376_v13 = vpack.c.bf16 %v600_v61, %v598_v60  ;;  %v478_v16 = vld [vmem:[%s4671_s0 + $0x2c8] sm:$0xff]  ;;  %v608_v46 = vld [vmem:[%s4671_s0 + $0x6d8] sm:$0xff] }
  0x4d   :  { %1137 = vmatmul.mubr.f32.gmra.mrb[4].mxu0 %v249_v17  ;;  %772 = vmatprep.mubr.f32.mxu1 %v254_v20  ;;  %v602_v17 = vld [vmem:[%s4671_s0 + $0x6a8] sm:$0xff]  ;;  %v273_v20 = vmul.f32 %v3080_v32, %v65_v6  ;;  %v73_v28 = vld [vmem:[%s4673_s2 + $0x1a0] sm:$0xff]  ;;  %v2254_v34 = vpack.c.bf16 %v475_v12, %v473_v11  ;;  %v484_v49 = vld [vmem:[%s4671_s0 + $0x2f8] sm:$0xff]  ;;  %v2384_v61 = vpack.c.bf16 %v608_v46, %v606_v45 }
  0x4e   :  { %2243 = vmatpush1.bf16.msra.mxu1 %v2242_v21  ;;  %1142 = vmatprep.mubr.f32.mxu0 %v258_v26  ;;  %v480_v21 = vld [vmem:[%s4671_s0 + $0x2d8] sm:$0xff]  ;;  %v282_v26 = vmul.f32 %v3074_v30, %v74_v9  ;;  %v477_v36 = vld [vmem:[%s4671_s0 + $0x2c0] sm:$0xff]  ;;  %v2380_v38 = vpack.c.bf16 %v604_v18, %v602_v17  ;;  %v607_v51 = vld [vmem:[%s4671_s0 + $0x6d0] sm:$0xff] }
  0x4f   :  { %2245 = vmatprep.subr.bf16.mxu1 %v2244_v27  ;;  %2371 = vmatpush1.bf16.msra.mxu0 %v2370_v35  ;;  %v69_v27 = vld [vmem:[%s4673_s2 + $0x180] sm:$0xff]  ;;  %v82_v35 = vld [vmem:[%s4673_s2 + $0x1e8] sm:$0xff]  ;;  %v483_v60 = vld [vmem:[%s4671_s0 + $0x2f0] sm:$0xff] }
  0x50   :  { %773 = vmatmul.mubr.f32.gmra.mrb[6].mxu1 %v253_v39  ;;  %2373 = vmatprep.subr.bf16.mxu0 %v2372_v54  ;;  %v2256_v39 = vpack.c.bf16 %v480_v21, %v478_v16  ;;  %v605_v50 = vld [vmem:[%s4671_s0 + $0x6c0] sm:$0xff]  ;;  %v290_v53 = vmul.f32 %v3074_v30, %v82_v35  ;;  %v86_v56 = vld [vmem:[%s4673_s2 + $0x208] sm:$0xff]  ;;  %v612_v2 = vld [vmem:[%s4671_s0 + $0x6f8] sm:$0xff] }
  0x51   :  { %1143 = vmatmul.mubr.f32.gmra.mrb[6].mxu0 %v257_v43  ;;  %778 = vmatprep.mubr.f32.mxu1 %v262_v47  ;;  %v482_v43 = vld [vmem:[%s4671_s0 + $0x2e8] sm:$0xff]  ;;  %v277_v47 = vmul.f32 %v3077_v31, %v69_v27  ;;  %v77_v54 = vld [vmem:[%s4673_s2 + $0x1c0] sm:$0xff]  ;;  %v2386_v0 = vpack.c.bf16 %v607_v51, %v605_v50  ;;  %v488_v5 = vld [vmem:[%s4671_s0 + $0x318] sm:$0xff] }
  0x52   :  { %1148 = vmatprep.mubr.f32.mxu0 %v266_v48  ;;  %2247 = vmatpush1.bf16.msra.mxu1 %v2246_v52  ;;  %v281_v48 = vmul.f32 %v3080_v32, %v73_v28  ;;  %v286_v52 = vmul.f32 %v3071_v29, %v78_v33  ;;  %v81_v55 = vld [vmem:[%s4673_s2 + $0x1e0] sm:$0xff]  ;;  %v610_v1 = vld [vmem:[%s4671_s0 + $0x6e8] sm:$0xff]  ;;  %v611_v7 = vld [vmem:[%s4671_s0 + $0x6f0] sm:$0xff] }
  0x53   :  { %2249 = vmatprep.subr.bf16.mxu1 %v2248_v57  ;;  %2375 = vmatpush1.bf16.msra.mxu0 %v2374_v58  ;;  %v2258_v57 = vpack.c.bf16 %v479_v37, %v477_v36  ;;  %v90_v58 = vld [vmem:[%s4673_s2 + $0x228] sm:$0xff]  ;;  %v481_v59 = vld [vmem:[%s4671_s0 + $0x2e0] sm:$0xff]  ;;  %v487_v17 = vld [vmem:[%s4671_s0 + $0x310] sm:$0xff]  ;;  %v2388_v18 = vpack.c.bf16 %v612_v2, %v610_v1 }
  0x54   :  { %779 = vmatmul.mubr.f32.gmra.mrb[8].mxu1 %v261_v62  ;;  %2377 = vmatprep.subr.bf16.mxu0 %v2376_v13  ;;  %v2260_v62 = vpack.c.bf16 %v484_v49, %v482_v43  ;;  %v609_v6 = vld [vmem:[%s4671_s0 + $0x6e0] sm:$0xff]  ;;  %v298_v9 = vmul.f32 %v3074_v30, %v90_v58  ;;  %v94_v13 = vld [vmem:[%s4673_s2 + $0x248] sm:$0xff]  ;;  %v616_v23 = vld [vmem:[%s4671_s0 + $0x718] sm:$0xff] }
  0x55   :  { %1149 = vmatmul.mubr.f32.gmra.mrb[8].mxu0 %v265_v63  ;;  %784 = vmatprep.mubr.f32.mxu1 %v270_v3  ;;  %v486_v63 = vld [vmem:[%s4671_s0 + $0x308] sm:$0xff]  ;;  %v285_v3 = vmul.f32 %v3077_v31, %v77_v54  ;;  %v85_v11 = vld [vmem:[%s4673_s2 + $0x200] sm:$0xff]  ;;  %v2390_v21 = vpack.c.bf16 %v611_v7, %v609_v6  ;;  %v492_v27 = vld [vmem:[%s4671_s0 + $0x338] sm:$0xff] }
  0x56   :  { %1154 = vmatprep.mubr.f32.mxu0 %v274_v4  ;;  %2251 = vmatpush1.bf16.msra.mxu1 %v2250_v8  ;;  %v289_v4 = vmul.f32 %v3080_v32, %v81_v55  ;;  %v294_v8 = vmul.f32 %v3071_v29, %v86_v56  ;;  %v89_v12 = vld [vmem:[%s4673_s2 + $0x220] sm:$0xff]  ;;  %v614_v22 = vld [vmem:[%s4671_s0 + $0x708] sm:$0xff]  ;;  %v615_v33 = vld [vmem:[%s4671_s0 + $0x710] sm:$0xff] }
  0x57   :  { %2253 = vmatprep.subr.bf16.mxu1 %v2252_v14  ;;  %2379 = vmatpush1.bf16.msra.mxu0 %v2378_v15  ;;  %v98_v14 = vld [vmem:[%s4673_s2 + $0x268] sm:$0xff]  ;;  %v2262_v15 = vpack.c.bf16 %v483_v60, %v481_v59  ;;  %v485_v16 = vld [vmem:[%s4671_s0 + $0x300] sm:$0xff]  ;;  %v491_v45 = vld [vmem:[%s4671_s0 + $0x330] sm:$0xff]  ;;  %v2392_v46 = vpack.c.bf16 %v616_v23, %v614_v22 }
  0x58   :  { %785 = vmatmul.mubr.f32.gmra.mrb[10].mxu1 %v269_v19  ;;  %2381 = vmatprep.subr.bf16.mxu0 %v2380_v38  ;;  %v2264_v19 = vpack.c.bf16 %v488_v5, %v486_v63  ;;  %v613_v28 = vld [vmem:[%s4671_s0 + $0x700] sm:$0xff]  ;;  %v306_v35 = vmul.f32 %v3074_v30, %v98_v14  ;;  %v102_v38 = vld [vmem:[%s4673_s2 + $0x288] sm:$0xff]  ;;  %v2266_v43 = vpack.c.bf16 %v487_v17, %v485_v16  ;;  %v496_v54 = vld [vmem:[%s4671_s0 + $0x358] sm:$0xff] }
  0x59   :  { %1155 = vmatmul.mubr.f32.gmra.mrb[10].mxu0 %v273_v20  ;;  %790 = vmatprep.mubr.f32.mxu1 %v278_v25  ;;  %v490_v20 = vld [vmem:[%s4671_s0 + $0x328] sm:$0xff]  ;;  %v293_v25 = vmul.f32 %v3077_v31, %v85_v11  ;;  %v93_v36 = vld [vmem:[%s4673_s2 + $0x240] sm:$0xff]  ;;  %v2394_v50 = vpack.c.bf16 %v615_v33, %v613_v28  ;;  %v619_v56 = vld [vmem:[%s4671_s0 + $0x730] sm:$0xff] }
  0x5a   :  { %1160 = vmatprep.mubr.f32.mxu0 %v282_v26  ;;  %2255 = vmatpush1.bf16.msra.mxu1 %v2254_v34  ;;  %v297_v26 = vmul.f32 %v3080_v32, %v89_v12  ;;  %v302_v34 = vmul.f32 %v3071_v29, %v94_v13  ;;  %v97_v37 = vld [vmem:[%s4673_s2 + $0x260] sm:$0xff]  ;;  %v494_v49 = vld [vmem:[%s4671_s0 + $0x348] sm:$0xff]  ;;  %v495_v1 = vld [vmem:[%s4671_s0 + $0x350] sm:$0xff] }
  0x5b   :  { %2257 = vmatprep.subr.bf16.mxu1 %v2256_v39  ;;  %2383 = vmatpush1.bf16.msra.mxu0 %v2382_v44  ;;  %v106_v39 = vld [vmem:[%s4673_s2 + $0x2a8] sm:$0xff]  ;;  %v489_v44 = vld [vmem:[%s4671_s0 + $0x320] sm:$0xff]  ;;  %v500_v11 = vld [vmem:[%s4671_s0 + $0x378] sm:$0xff] }
  0x5c   :  { %791 = vmatmul.mubr.f32.gmra.mrb[12].mxu1 %v277_v47  ;;  %2385 = vmatprep.subr.bf16.mxu0 %v2384_v61  ;;  %v215_v47 = vsub.s32 6, %v3035_v10  ;;  %v618_v51 = vld [vmem:[%s4671_s0 + $0x728] sm:$0xff]  ;;  %v301_v10 = vmul.f32 %v3077_v31, %v93_v36  ;;  %v617_v55 = vld [vmem:[%s4671_s0 + $0x720] sm:$0xff]  ;;  %v314_v58 = vmul.f32 %v3074_v30, %v106_v39  ;;  %v2270_v63 = vpack.c.bf16 %v491_v45, %v489_v44  ;;  %v623_v13 = vld [vmem:[%s4671_s0 + $0x750] sm:$0xff] }
  0x5d   :  { %1161 = vmatmul.mubr.f32.gmra.mrb[12].mxu0 %v281_v48  ;;  %796 = vmatprep.mubr.f32.mxu1 %v286_v52  ;;  %v2268_v48 = vpack.c.bf16 %v492_v27, %v490_v20  ;;  %v620_v52 = vld [vmem:[%s4671_s0 + $0x738] sm:$0xff]  ;;  %v101_v59 = vld [vmem:[%s4673_s2 + $0x280] sm:$0xff]  ;;  %v110_v61 = vld [vmem:[%s4673_s2 + $0x2c8] sm:$0xff]  ;;  %v2398_v6 = vpack.c.bf16 %v619_v56, %v617_v55 }
  0x5e   :  { %1166 = vmatprep.mubr.f32.mxu0 %v290_v53  ;;  %2259 = vmatpush1.bf16.msra.mxu1 %v2258_v57  ;;  %v305_v53 = vmul.f32 %v3080_v32, %v97_v37  ;;  %v310_v57 = vmul.f32 %v3071_v29, %v102_v38  ;;  %v105_v60 = vld [vmem:[%s4673_s2 + $0x2a0] sm:$0xff]  ;;  %v2396_v2 = vpack.c.bf16 %v620_v52, %v618_v51  ;;  %v498_v5 = vld [vmem:[%s4671_s0 + $0x368] sm:$0xff]  ;;  %v499_v22 = vld [vmem:[%s4671_s0 + $0x370] sm:$0xff] }
  0x5f   :  { %2261 = vmatprep.subr.bf16.mxu1 %v2260_v62  ;;  %2387 = vmatpush1.bf16.msra.mxu0 %v2386_v0  ;;  %v114_v62 = vld [vmem:[%s4673_s2 + $0x2e8] sm:$0xff]  ;;  %v493_v0 = vld [vmem:[%s4671_s0 + $0x340] sm:$0xff]  ;;  %v318_v14 = vmul.f32 %v3071_v29, %v110_v61  ;;  %v628_v33 = vld [vmem:[%s4671_s0 + $0x778] sm:$0xff] }
  0x60   :  { %797 = vmatmul.mubr.f32.gmra.mrb[14].mxu1 %v285_v3  ;;  %2389 = vmatprep.subr.bf16.mxu0 %v2388_v18  ;;  %v3489_v3 = vrot.slane %v3059_v24, %v215_v47  ;;  %v622_v7 = vld [vmem:[%s4671_s0 + $0x748] sm:$0xff]  ;;  %v309_v24 = vmul.f32 %v3077_v31, %v101_v59  ;;  %v621_v12 = vld [vmem:[%s4671_s0 + $0x740] sm:$0xff]  ;;  %v2274_v20 = vpack.c.bf16 %v495_v1, %v493_v0  ;;  %v504_v36 = vld [vmem:[%s4671_s0 + $0x398] sm:$0xff] }
  0x61   :  { %1167 = vmatmul.mubr.f32.gmra.mrb[14].mxu0 %v289_v4  ;;  %802 = vmatprep.mubr.f32.mxu1 %v294_v8  ;;  %v2272_v4 = vpack.c.bf16 %v496_v54, %v494_v49  ;;  %v624_v8 = vld [vmem:[%s4671_s0 + $0x758] sm:$0xff]  ;;  %v109_v16 = vld [vmem:[%s4673_s2 + $0x2c0] sm:$0xff]  ;;  %v118_v18 = vld [vmem:[%s4673_s2 + $0x308] sm:$0xff]  ;;  %v2402_v27 = vpack.c.bf16 %v623_v13, %v621_v12 }
  0x62   :  { %1172 = vmatprep.mubr.f32.mxu0 %v298_v9  ;;  %2263 = vmatpush1.bf16.msra.mxu1 %v2262_v15  ;;  %v313_v9 = vmul.f32 %v3080_v32, %v105_v60  ;;  %v322_v15 = vmul.f32 %v3074_v30, %v114_v62  ;;  %v113_v17 = vld [vmem:[%s4673_s2 + $0x2e0] sm:$0xff]  ;;  %v2400_v23 = vpack.c.bf16 %v624_v8, %v622_v7  ;;  %v626_v28 = vld [vmem:[%s4671_s0 + $0x768] sm:$0xff]  ;;  %v627_v38 = vld [vmem:[%s4671_s0 + $0x770] sm:$0xff] }
  0x63   :  { %2265 = vmatprep.subr.bf16.mxu1 %v2264_v19  ;;  %2391 = vmatpush1.bf16.msra.mxu0 %v2390_v21  ;;  %v122_v19 = vld [vmem:[%s4673_s2 + $0x328] sm:$0xff]  ;;  %v497_v21 = vld [vmem:[%s4671_s0 + $0x360] sm:$0xff]  ;;  %v326_v39 = vmul.f32 %v3071_v29, %v118_v18  ;;  %v2404_v49 = vpack.c.bf16 %v628_v33, %v626_v28  ;;  %v503_v52 = vld [vmem:[%s4671_s0 + $0x390] sm:$0xff] }
  0x64   :  { %803 = vmatmul.mubr.f32.gmra.mrb[16].mxu1 %v293_v25  ;;  %2393 = vmatprep.subr.bf16.mxu0 %v2392_v46  ;;  %v2276_v25 = vpack.c.bf16 %v500_v11, %v498_v5  ;;  %v625_v37 = vld [vmem:[%s4671_s0 + $0x760] sm:$0xff]  ;;  %v126_v46 = vld [vmem:[%s4673_s2 + $0x348] sm:$0xff]  ;;  %v508_v56 = vld [vmem:[%s4671_s0 + $0x3b8] sm:$0xff] }
  0x65   :  { %1173 = vmatmul.mubr.f32.gmra.mrb[16].mxu0 %v297_v26  ;;  %808 = vmatprep.mubr.f32.mxu1 %v302_v34  ;;  %v502_v26 = vld [vmem:[%s4671_s0 + $0x388] sm:$0xff]  ;;  %v317_v34 = vmul.f32 %v3077_v31, %v109_v16  ;;  %v117_v44 = vld [vmem:[%s4673_s2 + $0x300] sm:$0xff]  ;;  %v512_v7 = vld [vmem:[%s4671_s0 + $0x3d8] sm:$0xff] }
  0x66   :  { %1178 = vmatprep.mubr.f32.mxu0 %v306_v35  ;;  %2267 = vmatpush1.bf16.msra.mxu1 %v2266_v43  ;;  %v321_v35 = vmul.f32 %v3080_v32, %v113_v17  ;;  %v330_v43 = vmul.f32 %v3074_v30, %v122_v19  ;;  %v121_v45 = vld [vmem:[%s4673_s2 + $0x320] sm:$0xff]  ;;  %v130_v47 = vld [vmem:[%s4673_s2 + $0x368] sm:$0xff]  ;;  %v511_v17 = vld [vmem:[%s4671_s0 + $0x3d0] sm:$0xff] }
  0x67   :  { %2269 = vmatprep.subr.bf16.mxu1 %v2268_v48  ;;  %2395 = vmatpush1.bf16.msra.mxu0 %v2394_v50  ;;  %v2278_v48 = vpack.c.bf16 %v499_v22, %v497_v21  ;;  %v2280_v50 = vpack.c.bf16 %v504_v36, %v502_v26  ;;  %v501_v51 = vld [vmem:[%s4671_s0 + $0x380] sm:$0xff]  ;;  %v329_v54 = vmul.f32 %v3080_v32, %v121_v45  ;;  %v506_v55 = vld [vmem:[%s4671_s0 + $0x3a8] sm:$0xff]  ;;  %v516_v21 = vld [vmem:[%s4671_s0 + $0x3f8] sm:$0xff] }
  0x68   :  { %809 = vmatmul.mubr.f32.gmra.mrb[18].mxu1 %v301_v10  ;;  %2397 = vmatprep.subr.bf16.mxu0 %v2396_v2  ;;  %v2406_v10 = vpack.c.bf16 %v627_v38, %v625_v37  ;;  %v125_v59 = vld [vmem:[%s4673_s2 + $0x340] sm:$0xff]  ;;  %v134_v61 = vld [vmem:[%s4673_s2 + $0x388] sm:$0xff]  ;;  %v2284_v0 = vpack.c.bf16 %v508_v56, %v506_v55  ;;  %v507_v2 = vld [vmem:[%s4671_s0 + $0x3b0] sm:$0xff] }
  0x69   :  { %1179 = vmatmul.mubr.f32.gmra.mrb[18].mxu0 %v305_v53  ;;  %814 = vmatprep.mubr.f32.mxu1 %v310_v57  ;;  %v325_v53 = vmul.f32 %v3077_v31, %v117_v44  ;;  %v334_v57 = vmul.f32 %v3071_v29, %v126_v46  ;;  %v129_v60 = vld [vmem:[%s4673_s2 + $0x360] sm:$0xff]  ;;  %v138_v62 = vld [vmem:[%s4673_s2 + $0x3a8] sm:$0xff]  ;;  %v342_v8 = vmul.f32 %v3071_v29, %v134_v61  ;;  %v515_v37 = vld [vmem:[%s4671_s0 + $0x3f0] sm:$0xff] }
  0x6a   :  { %1184 = vmatprep.mubr.f32.mxu0 %v314_v58  ;;  %2271 = vmatpush1.bf16.msra.mxu1 %v2270_v63  ;;  %v338_v58 = vmul.f32 %v3074_v30, %v130_v47  ;;  %v2282_v63 = vpack.c.bf16 %v503_v52, %v501_v51  ;;  %v505_v1 = vld [vmem:[%s4671_s0 + $0x3a0] sm:$0xff]  ;;  %v337_v5 = vmul.f32 %v3080_v32, %v129_v60  ;;  %v142_v12 = vld [vmem:[%s4673_s2 + $0x3c8] sm:$0xff] }
  0x6b   :  { %2273 = vmatprep.subr.bf16.mxu1 %v2272_v4  ;;  %2399 = vmatpush1.bf16.msra.mxu0 %v2398_v6  ;;  %v333_v4 = vmul.f32 %v3077_v31, %v125_v59  ;;  %v510_v6 = vld [vmem:[%s4671_s0 + $0x3c8] sm:$0xff]  ;;  %v137_v11 = vld [vmem:[%s4673_s2 + $0x3a0] sm:$0xff]  ;;  %v350_v22 = vmul.f32 %v3071_v29, %v142_v12 }
  0x6c   :  { %815 = vmatmul.mubr.f32.gmra.mrb[20].mxu1 %v309_v24  ;;  %2401 = vmatprep.subr.bf16.mxu0 %v2400_v23  ;;  %v346_v24 = vmul.f32 %v3074_v30, %v138_v62  ;;  %v146_v13 = vld [vmem:[%s4673_s2 + $0x3e8] sm:$0xff]  ;;  %v509_v16 = vld [vmem:[%s4671_s0 + $0x3c0] sm:$0xff]  ;;  %v345_v19 = vmul.f32 %v3080_v32, %v137_v11 }
  0x6d   :  { %1185 = vmatmul.mubr.f32.gmra.mrb[20].mxu0 %v313_v9  ;;  %820 = vmatprep.mubr.f32.mxu1 %v318_v14  ;;  %v133_v9 = vld [vmem:[%s4673_s2 + $0x380] sm:$0xff]  ;;  %v2286_v14 = vpack.c.bf16 %v507_v2, %v505_v1  ;;  %v354_v23 = vmul.f32 %v3074_v30, %v146_v13  ;;  %v154_v28 = vld [vmem:[%s4673_s2 + $0x428] sm:$0xff]  ;;  %v2290_v33 = vpack.c.bf16 %v511_v17, %v509_v16 }
  0x6e   :  { %1190 = vmatprep.mubr.f32.mxu0 %v322_v15  ;;  %2275 = vmatpush1.bf16.msra.mxu1 %v2274_v20  ;;  %v2288_v15 = vpack.c.bf16 %v512_v7, %v510_v6  ;;  %v341_v18 = vmul.f32 %v3077_v31, %v133_v9  ;;  %v514_v20 = vld [vmem:[%s4671_s0 + $0x3e8] sm:$0xff]  ;;  %v145_v26 = vld [vmem:[%s4673_s2 + $0x3e0] sm:$0xff]  ;;  %v362_v44 = vmul.f32 %v3074_v30, %v154_v28 }
  0x6f   :  { %2277 = vmatprep.subr.bf16.mxu1 %v2276_v25  ;;  %2403 = vmatpush1.bf16.msra.mxu0 %v2402_v27  ;;  %v141_v25 = vld [vmem:[%s4673_s2 + $0x3c0] sm:$0xff]  ;;  %v150_v27 = vld [vmem:[%s4673_s2 + $0x408] sm:$0xff] }
  0x70   :  { %821 = vmatmul.mubr.f32.gmra.mrb[22].mxu1 %v317_v34  ;;  %2405 = vmatprep.subr.bf16.mxu0 %v2404_v49  ;;  %v2602_v34 = vmov 0   ;;  %v513_v36 = vld [vmem:[%s4671_s0 + $0x3e0] sm:$0xff]  ;;  %v349_v38 = vmul.f32 %v3077_v31, %v141_v25  ;;  %v158_v47 = vld [vmem:[%s4673_s2 + $0x448] sm:$0xff] }
  0x71   :  { %1191 = vmatmul.mubr.f32.gmra.mrb[22].mxu0 %v321_v35  ;;  %826 = vmatprep.mubr.f32.mxu1 %v326_v39  ;;  %v2292_v35 = vpack.c.bf16 %v516_v21, %v514_v20  ;;  %v353_v39 = vmul.f32 %v3080_v32, %v145_v26  ;;  %v149_v45 = vld [vmem:[%s4673_s2 + $0x400] sm:$0xff]  ;;  %v2294_v49 = vpack.c.bf16 %v515_v37, %v513_v36 }
  0x72   :  { %1196 = vmatprep.mubr.f32.mxu0 %v330_v43  ;;  %2279 = vmatpush1.bf16.msra.mxu1 %v2278_v48  ;;  %v358_v43 = vmul.f32 %v3071_v29, %v150_v27  ;;  %v153_v46 = vld [vmem:[%s4673_s2 + $0x420] sm:$0xff]  ;;  %v162_v48 = vld [vmem:[%s4673_s2 + $0x468] sm:$0xff] }
  0x73   :  { %2281 = vmatprep.subr.bf16.mxu1 %v2280_v50  ;;  %2407 = vmatpush1.bf16.msra.mxu0 %v2406_v10  ;;  %v1931_v50 = vld [vmem:[%s4675_s4] sm:$0xff] }
  0x74   :  { %827 = vmatmul.mubr.f32.gmra.mrb[24].mxu1 %v325_v53  ;;  %2532 = vset.pattern.permute.xlu1 %v2602_v34 }
  0x75   :  { %1197 = vmatmul.mubr.f32.gmra.mrb[24].mxu0 %v329_v54  ;;  %832 = vmatprep.mubr.f32.mxu1 %v334_v57 }
  0x76   :  { %1202 = vmatprep.mubr.f32.mxu0 %v338_v58  ;;  %2283 = vmatpush1.bf16.msra.mxu1 %v2282_v63 }
  0x77   :  { %2285 = vmatprep.subr.bf16.mxu1 %v2284_v0  ;;  %2533 = vset.pattern.permute.xlu0 %v2602_v34 }
  0x78   :  { %833 = vmatmul.mubr.f32.gmra.mrb[26].mxu1 %v333_v4  ;;  %1953 = vperm.xlu1 %2532, %v1931_v50  }
  0x79   :  { %1203 = vmatmul.mubr.f32.gmra.mrb[26].mxu0 %v337_v5  ;;  %838 = vmatprep.mubr.f32.mxu1 %v342_v8 }
  0x7a   :  { %1208 = vmatprep.mubr.f32.mxu0 %v346_v24  ;;  %2287 = vmatpush1.bf16.msra.mxu1 %v2286_v14 }
  0x7b   :  { %2289 = vmatprep.subr.bf16.mxu1 %v2288_v15 }
  0x7c   :  { %839 = vmatmul.mubr.f32.gmra.mrb[28].mxu1 %v341_v18 }
  0x7d   :  { %1209 = vmatmul.mubr.f32.gmra.mrb[28].mxu0 %v345_v19  ;;  %844 = vmatprep.mubr.f32.mxu1 %v350_v22 }
  0x7e   :  { %1214 = vmatprep.mubr.f32.mxu0 %v354_v23  ;;  %2291 = vmatpush1.bf16.msra.mxu1 %v2290_v33 }
  0x7f   :  { %2293 = vmatprep.subr.bf16.mxu1 %v2292_v35 }
  0x80   :  { %10 = vsyncpa [#allocation3], 0  ;;  %845 = vmatmul.mubr.f32.gmra.mrb[30].mxu1 %v349_v38  ;;  %v357_v51 = vmul.f32 %v3077_v31, %v149_v45  ;;  %v361_v52 = vmul.f32 %v3080_v32, %v153_v46  ;;  %v366_v10 = vmul.f32 %v3071_v29, %v158_v47  ;;  %v370_v53 = vmul.f32 %v3074_v30, %v162_v48  ;;  %v157_v54 = vld [vmem:[%s4673_s2 + $0x440] sm:$0xff]  ;;  %v166_v56 = vld [vmem:[%s4673_s2 + $0x488] sm:$0xff] }
  0x81   :  { %1215 = vmatmul.mubr.f32.gmra.mrb[30].mxu0 %v353_v39  ;;  %850 = vmatprep.mubr.f32.mxu1 %v358_v43  ;;  %v161_v55 = vld [vmem:[%s4673_s2 + $0x460] sm:$0xff]  ;;  %v170_v57 = vld [vmem:[%s4673_s2 + $0x4a8] sm:$0xff]  ;;  %v365_v58 = vmul.f32 %v3077_v31, %v157_v54  ;;  %v374_v60 = vmul.f32 %v3071_v29, %v166_v56  ;;  %v24_v24 = vld [vmem:[%s4673_s2 + $0x18] sm:$0xff]  ;;  %vm629_vm0 = vcmask 523264   ;;  %vm1430_vm1 = vcmask 556032  }
  0x82   :  { %1220 = vmatprep.mubr.f32.mxu0 %v362_v44  ;;  %2295 = vmatpush1.bf16.msra.mxu1 %v2294_v49  ;;  %v369_v59 = vmul.f32 %v3080_v32, %v161_v55  ;;  %v378_v61 = vmul.f32 %v3074_v30, %v170_v57  ;;  %v165_v62 = vld [vmem:[%s4673_s2 + $0x480] sm:$0xff]  ;;  %v174_v0 = vld [vmem:[%s4673_s2 + $0x4c8] sm:$0xff]  ;;  %v28_v9 = vld [vmem:[%s4673_s2 + $0x38] sm:$0xff]  ;;  %v232_v11 = vmul.f32 %v3101_v40, %v24_v24 }
  0x83   :  { %v169_v63 = vld [vmem:[%s4673_s2 + $0x4a0] sm:$0xff]  ;;  %v178_v1 = vld [vmem:[%s4673_s2 + $0x4e8] sm:$0xff]  ;;  %v373_v2 = vmul.f32 %v3077_v31, %v165_v62  ;;  %v382_v5 = vmul.f32 %v3071_v29, %v174_v0  ;;  %v236_v12 = vmul.f32 %v3104_v41, %v28_v9  ;;  %v23_v13 = vld [vmem:[%s4673_s2 + $0x10] sm:$0xff] }
  0x84   :  { %851 = vmatmul.mubr.f32.gmra.mrb[32].mxu1 %v357_v51  ;;  %v377_v4 = vmul.f32 %v3080_v32, %v169_v63  ;;  %v386_v6 = vmul.f32 %v3074_v30, %v178_v1  ;;  %v173_v7 = vld [vmem:[%s4673_s2 + $0x4c0] sm:$0xff]  ;;  %v27_v14 = vld [vmem:[%s4673_s2 + $0x30] sm:$0xff]  ;;  %v231_v15 = vmul.f32 %v3107_v42, %v23_v13  ;;  %v40_v21 = vld [vmem:[%s4673_s2 + $0x98] sm:$0xff] }
  0x85   :  { %1221 = vmatmul.mubr.f32.gmra.mrb[32].mxu0 %v361_v52  ;;  %856 = vmatprep.mubr.f32.mxu1 %v366_v10  ;;  %v177_v8 = vld [vmem:[%s4673_s2 + $0x4e0] sm:$0xff]  ;;  %v381_v29 = vmul.f32 %v3077_v31, %v173_v7  ;;  %v32_v31 = vld [vmem:[%s4673_s2 + $0x58] sm:$0xff]  ;;  %v235_v16 = vmul.f32 %v3489_v3, %v27_v14  ;;  %v31_v19 = vld [vmem:[%s4673_s2 + $0x50] sm:$0xff]  ;;  %v248_v26 = vmul.f32 %v3101_v40, %v40_v21 }
  0x86   :  { %1226 = vmatprep.mubr.f32.mxu0 %v370_v53  ;;  %v385_v30 = vmul.f32 %v3080_v32, %v177_v8  ;;  %v36_v32 = vld [vmem:[%s4673_s2 + $0x78] sm:$0xff]  ;;  %v240_v17 = vmul.f32 %v3101_v40, %v32_v31  ;;  %v35_v20 = vld [vmem:[%s4673_s2 + $0x70] sm:$0xff]  ;;  %v239_v23 = vmul.f32 %v3107_v42, %v31_v19 }
  0x87   :  { %v244_v18 = vmul.f32 %v3104_v41, %v36_v32  ;;  %v44_v22 = vld [vmem:[%s4673_s2 + $0xb8] sm:$0xff]  ;;  %v243_v25 = vmul.f32 %v3489_v3, %v35_v20  ;;  %v39_v28 = vld [vmem:[%s4673_s2 + $0x90] sm:$0xff] }
  0x88   :  { %857 = vmatmul.mubr.f32.gmra.mrb[34].mxu1 %v365_v58  ;;  %v252_v27 = vmul.f32 %v3104_v41, %v44_v22  ;;  %v43_v33 = vld [vmem:[%s4673_s2 + $0xb0] sm:$0xff]  ;;  %v48_v34 = vld [vmem:[%s4673_s2 + $0xd8] sm:$0xff]  ;;  %v247_v36 = vmul.f32 %v3107_v42, %v39_v28 }
  0x89   :  { %1227 = vmatmul.mubr.f32.gmra.mrb[34].mxu0 %v369_v59  ;;  %862 = vmatprep.mubr.f32.mxu1 %v374_v60  ;;  %v52_v35 = vld [vmem:[%s4673_s2 + $0xf8] sm:$0xff]  ;;  %v251_v37 = vmul.f32 %v3489_v3, %v43_v33  ;;  %v256_v38 = vmul.f32 %v3101_v40, %v48_v34  ;;  %v47_v43 = vld [vmem:[%s4673_s2 + $0xd0] sm:$0xff] }
  0x8a   :  { %1232 = vmatprep.mubr.f32.mxu0 %v378_v61  ;;  %v260_v39 = vmul.f32 %v3104_v41, %v52_v35  ;;  %v51_v44 = vld [vmem:[%s4673_s2 + $0xf0] sm:$0xff]  ;;  %v56_v45 = vld [vmem:[%s4673_s2 + $0x118] sm:$0xff]  ;;  %v255_v47 = vmul.f32 %v3107_v42, %v47_v43 }
  0x8b   :  { %v60_v46 = vld [vmem:[%s4673_s2 + $0x138] sm:$0xff]  ;;  %v259_v48 = vmul.f32 %v3489_v3, %v51_v44  ;;  %v264_v49 = vmul.f32 %v3101_v40, %v56_v45  ;;  %v55_v51 = vld [vmem:[%s4673_s2 + $0x110] sm:$0xff] }
  0x8c   :  { %863 = vmatmul.mubr.f32.gmra.mrb[36].mxu1 %v373_v2  ;;  %v268_v50 = vmul.f32 %v3104_v41, %v60_v46  ;;  %v59_v52 = vld [vmem:[%s4673_s2 + $0x130] sm:$0xff]  ;;  %v64_v10 = vld [vmem:[%s4673_s2 + $0x158] sm:$0xff]  ;;  %v263_v54 = vmul.f32 %v3107_v42, %v55_v51 }
  0x8d   :  { %1233 = vmatmul.mubr.f32.gmra.mrb[36].mxu0 %v377_v4  ;;  %868 = vmatprep.mubr.f32.mxu1 %v382_v5  ;;  %v68_v53 = vld [vmem:[%s4673_s2 + $0x178] sm:$0xff]  ;;  %v267_v55 = vmul.f32 %v3489_v3, %v59_v52  ;;  %v272_v56 = vmul.f32 %v3101_v40, %v64_v10  ;;  %v63_v58 = vld [vmem:[%s4673_s2 + $0x150] sm:$0xff] }
  0x8e   :  { %1238 = vmatprep.mubr.f32.mxu0 %v386_v6  ;;  %v276_v57 = vmul.f32 %v3104_v41, %v68_v53  ;;  %v67_v59 = vld [vmem:[%s4673_s2 + $0x170] sm:$0xff]  ;;  %v72_v60 = vld [vmem:[%s4673_s2 + $0x198] sm:$0xff]  ;;  %v271_v62 = vmul.f32 %v3107_v42, %v63_v58 }
  0x8f   :  { %v76_v61 = vld [vmem:[%s4673_s2 + $0x1b8] sm:$0xff]  ;;  %v275_v63 = vmul.f32 %v3489_v3, %v67_v59  ;;  %v280_v0 = vmul.f32 %v3101_v40, %v72_v60  ;;  %v71_v2 = vld [vmem:[%s4673_s2 + $0x190] sm:$0xff] }
  0x90   :  { %869 = vmatmul.mubr.f32.gmra.mrb[38].mxu1 %v381_v29  ;;  %v284_v1 = vmul.f32 %v3104_v41, %v76_v61  ;;  %v75_v4 = vld [vmem:[%s4673_s2 + $0x1b0] sm:$0xff]  ;;  %v80_v5 = vld [vmem:[%s4673_s2 + $0x1d8] sm:$0xff]  ;;  %v279_v7 = vmul.f32 %v3107_v42, %v71_v2 }
  0x91   :  { %1239 = vmatmul.mubr.f32.gmra.mrb[38].mxu0 %v385_v30  ;;  %939 = vmatprep.mubr.f32.mxu1 %v232_v11  ;;  %v84_v6 = vld [vmem:[%s4673_s2 + $0x1f8] sm:$0xff]  ;;  %v283_v8 = vmul.f32 %v3489_v3, %v75_v4  ;;  %v288_v24 = vmul.f32 %v3101_v40, %v80_v5  ;;  %v79_v29 = vld [vmem:[%s4673_s2 + $0x1d0] sm:$0xff] }
  0x92   :  { %2148 = vmatprep.mubr.msk.f32.mxu0 %vm629_vm0, %v236_v12  ;;  %v292_v9 = vmul.f32 %v3104_v41, %v84_v6  ;;  %v83_v30 = vld [vmem:[%s4673_s2 + $0x1f0] sm:$0xff]  ;;  %v88_v11 = vld [vmem:[%s4673_s2 + $0x218] sm:$0xff]  ;;  %v287_v13 = vmul.f32 %v3107_v42, %v79_v29 }
  0x93   :  { %v92_v12 = vld [vmem:[%s4673_s2 + $0x238] sm:$0xff]  ;;  %v291_v14 = vmul.f32 %v3489_v3, %v83_v30  ;;  %v296_v31 = vmul.f32 %v3101_v40, %v88_v11 }
  0x94   :  { %940 = vmatmul.mubr.f32.vlgmr.msra.gmra.mrb[0].mxu1 %v231_v15  ;;  %v300_v32 = vmul.f32 %v3104_v41, %v92_v12  ;;  %v87_v15 = vld [vmem:[%s4673_s2 + $0x210] sm:$0xff] }
  0x95   :  { %1310 = vmatmul.mubr.f32.vlgmr.msra.gmra.mrb[0].mxu0 %v235_v16  ;;  %945 = vmatprep.mubr.f32.mxu1 %v240_v17  ;;  %v91_v16 = vld [vmem:[%s4673_s2 + $0x230] sm:$0xff]  ;;  %v96_v17 = vld [vmem:[%s4673_s2 + $0x258] sm:$0xff]  ;;  %v295_v19 = vmul.f32 %v3107_v42, %v87_v15 }
  0x96   :  { %2149 = vmatprep.mubr.msk.f32.mxu0 %vm629_vm0, %v244_v18  ;;  %v100_v18 = vld [vmem:[%s4673_s2 + $0x278] sm:$0xff]  ;;  %v299_v20 = vmul.f32 %v3489_v3, %v91_v16  ;;  %v304_v21 = vmul.f32 %v3101_v40, %v96_v17 }
  0x97   :  { %v308_v22 = vmul.f32 %v3104_v41, %v100_v18 }
  0x98   :  { %946 = vmatmul.mubr.f32.gmra.mrb[2].mxu1 %v239_v23  ;;  %v95_v23 = vld [vmem:[%s4673_s2 + $0x250] sm:$0xff] }
  0x99   :  { %1316 = vmatmul.mubr.f32.gmra.mrb[2].mxu0 %v243_v25  ;;  %951 = vmatprep.mubr.f32.mxu1 %v248_v26  ;;  %v99_v25 = vld [vmem:[%s4673_s2 + $0x270] sm:$0xff]  ;;  %v104_v26 = vld [vmem:[%s4673_s2 + $0x298] sm:$0xff]  ;;  %v303_v28 = vmul.f32 %v3107_v42, %v95_v23 }
  0x9a   :  { %2150 = vmatprep.mubr.msk.f32.mxu0 %vm629_vm0, %v252_v27  ;;  %v108_v27 = vld [vmem:[%s4673_s2 + $0x2b8] sm:$0xff]  ;;  %v307_v33 = vmul.f32 %v3489_v3, %v99_v25  ;;  %v312_v34 = vmul.f32 %v3101_v40, %v104_v26 }
  0x9b   :  { %v316_v35 = vmul.f32 %v3104_v41, %v108_v27 }
  0x9c   :  { %952 = vmatmul.mubr.f32.gmra.mrb[4].mxu1 %v247_v36  ;;  %v103_v36 = vld [vmem:[%s4673_s2 + $0x290] sm:$0xff] }
  0x9d   :  { %1322 = vmatmul.mubr.f32.gmra.mrb[4].mxu0 %v251_v37  ;;  %957 = vmatprep.mubr.f32.mxu1 %v256_v38  ;;  %v107_v37 = vld [vmem:[%s4673_s2 + $0x2b0] sm:$0xff]  ;;  %v112_v38 = vld [vmem:[%s4673_s2 + $0x2d8] sm:$0xff]  ;;  %v311_v43 = vmul.f32 %v3107_v42, %v103_v36 }
  0x9e   :  { %2151 = vmatprep.mubr.msk.f32.mxu0 %vm629_vm0, %v260_v39  ;;  %v116_v39 = vld [vmem:[%s4673_s2 + $0x2f8] sm:$0xff]  ;;  %v315_v44 = vmul.f32 %v3489_v3, %v107_v37  ;;  %v320_v45 = vmul.f32 %v3101_v40, %v112_v38 }
  0x9f   :  { %v324_v46 = vmul.f32 %v3104_v41, %v116_v39 }
  0xa0   :  { %958 = vmatmul.mubr.f32.gmra.mrb[6].mxu1 %v255_v47  ;;  %v111_v47 = vld [vmem:[%s4673_s2 + $0x2d0] sm:$0xff] }
  0xa1   :  { %1328 = vmatmul.mubr.f32.gmra.mrb[6].mxu0 %v259_v48  ;;  %963 = vmatprep.mubr.f32.mxu1 %v264_v49  ;;  %v115_v48 = vld [vmem:[%s4673_s2 + $0x2f0] sm:$0xff]  ;;  %v120_v49 = vld [vmem:[%s4673_s2 + $0x318] sm:$0xff]  ;;  %v319_v51 = vmul.f32 %v3107_v42, %v111_v47 }
  0xa2   :  { %2152 = vmatprep.mubr.msk.f32.mxu0 %vm629_vm0, %v268_v50  ;;  %v124_v50 = vld [vmem:[%s4673_s2 + $0x338] sm:$0xff]  ;;  %v323_v52 = vmul.f32 %v3489_v3, %v115_v48  ;;  %v328_v10 = vmul.f32 %v3101_v40, %v120_v49 }
  0xa3   :  { %v332_v53 = vmul.f32 %v3104_v41, %v124_v50 }
  0xa4   :  { %964 = vmatmul.mubr.f32.gmra.mrb[8].mxu1 %v263_v54  ;;  %v119_v54 = vld [vmem:[%s4673_s2 + $0x310] sm:$0xff] }
  0xa5   :  { %1334 = vmatmul.mubr.f32.gmra.mrb[8].mxu0 %v267_v55  ;;  %969 = vmatprep.mubr.f32.mxu1 %v272_v56  ;;  %v123_v55 = vld [vmem:[%s4673_s2 + $0x330] sm:$0xff]  ;;  %v128_v56 = vld [vmem:[%s4673_s2 + $0x358] sm:$0xff]  ;;  %v327_v58 = vmul.f32 %v3107_v42, %v119_v54 }
  0xa6   :  { %2153 = vmatprep.mubr.msk.f32.mxu0 %vm629_vm0, %v276_v57  ;;  %v132_v57 = vld [vmem:[%s4673_s2 + $0x378] sm:$0xff]  ;;  %v331_v59 = vmul.f32 %v3489_v3, %v123_v55  ;;  %v336_v60 = vmul.f32 %v3101_v40, %v128_v56 }
  0xa7   :  { %v340_v61 = vmul.f32 %v3104_v41, %v132_v57 }
  0xa8   :  { %970 = vmatmul.mubr.f32.gmra.mrb[10].mxu1 %v271_v62  ;;  %v127_v62 = vld [vmem:[%s4673_s2 + $0x350] sm:$0xff] }
  0xa9   :  { %1340 = vmatmul.mubr.f32.gmra.mrb[10].mxu0 %v275_v63  ;;  %975 = vmatprep.mubr.f32.mxu1 %v280_v0  ;;  %v131_v63 = vld [vmem:[%s4673_s2 + $0x370] sm:$0xff]  ;;  %v136_v0 = vld [vmem:[%s4673_s2 + $0x398] sm:$0xff]  ;;  %v335_v2 = vmul.f32 %v3107_v42, %v127_v62 }
  0xaa   :  { %2154 = vmatprep.mubr.msk.f32.mxu0 %vm629_vm0, %v284_v1  ;;  %v140_v1 = vld [vmem:[%s4673_s2 + $0x3b8] sm:$0xff]  ;;  %v339_v4 = vmul.f32 %v3489_v3, %v131_v63  ;;  %v344_v5 = vmul.f32 %v3101_v40, %v136_v0 }
  0xab   :  { %v348_v6 = vmul.f32 %v3104_v41, %v140_v1 }
  0xac   :  { %976 = vmatmul.mubr.f32.gmra.mrb[12].mxu1 %v279_v7  ;;  %v135_v7 = vld [vmem:[%s4673_s2 + $0x390] sm:$0xff] }
  0xad   :  { %1346 = vmatmul.mubr.f32.gmra.mrb[12].mxu0 %v283_v8  ;;  %981 = vmatprep.mubr.f32.mxu1 %v288_v24  ;;  %v139_v8 = vld [vmem:[%s4673_s2 + $0x3b0] sm:$0xff]  ;;  %v144_v24 = vld [vmem:[%s4673_s2 + $0x3d8] sm:$0xff]  ;;  %v343_v29 = vmul.f32 %v3107_v42, %v135_v7 }
  0xae   :  { %2155 = vmatprep.mubr.msk.f32.mxu0 %vm629_vm0, %v292_v9  ;;  %v148_v9 = vld [vmem:[%s4673_s2 + $0x3f8] sm:$0xff]  ;;  %v347_v30 = vmul.f32 %v3489_v3, %v139_v8  ;;  %v352_v11 = vmul.f32 %v3101_v40, %v144_v24 }
  0xaf   :  { %v356_v12 = vmul.f32 %v3104_v41, %v148_v9 }
  0xb0   :  { %982 = vmatmul.mubr.f32.gmra.mrb[14].mxu1 %v287_v13  ;;  %v143_v13 = vld [vmem:[%s4673_s2 + $0x3d0] sm:$0xff] }
  0xb1   :  { %1352 = vmatmul.mubr.f32.gmra.mrb[14].mxu0 %v291_v14  ;;  %987 = vmatprep.mubr.f32.mxu1 %v296_v31  ;;  %v147_v14 = vld [vmem:[%s4673_s2 + $0x3f0] sm:$0xff]  ;;  %v152_v31 = vld [vmem:[%s4673_s2 + $0x418] sm:$0xff]  ;;  %v351_v15 = vmul.f32 %v3107_v42, %v143_v13 }
  0xb2   :  { %2156 = vmatprep.mubr.msk.f32.mxu0 %vm629_vm0, %v300_v32  ;;  %v156_v32 = vld [vmem:[%s4673_s2 + $0x438] sm:$0xff]  ;;  %v355_v16 = vmul.f32 %v3489_v3, %v147_v14  ;;  %v360_v17 = vmul.f32 %v3101_v40, %v152_v31 }
  0xb3   :  { %v364_v18 = vmul.f32 %v3104_v41, %v156_v32 }
  0xb4   :  { %988 = vmatmul.mubr.f32.gmra.mrb[16].mxu1 %v295_v19  ;;  %v151_v19 = vld [vmem:[%s4673_s2 + $0x410] sm:$0xff] }
  0xb5   :  { %1358 = vmatmul.mubr.f32.gmra.mrb[16].mxu0 %v299_v20  ;;  %993 = vmatprep.mubr.f32.mxu1 %v304_v21  ;;  %v155_v20 = vld [vmem:[%s4673_s2 + $0x430] sm:$0xff]  ;;  %v160_v21 = vld [vmem:[%s4673_s2 + $0x458] sm:$0xff]  ;;  %v359_v23 = vmul.f32 %v3107_v42, %v151_v19 }
  0xb6   :  { %2157 = vmatprep.mubr.msk.f32.mxu0 %vm629_vm0, %v308_v22  ;;  %v164_v22 = vld [vmem:[%s4673_s2 + $0x478] sm:$0xff]  ;;  %v363_v25 = vmul.f32 %v3489_v3, %v155_v20  ;;  %v368_v26 = vmul.f32 %v3101_v40, %v160_v21 }
  0xb7   :  { %v372_v27 = vmul.f32 %v3104_v41, %v164_v22 }
  0xb8   :  { %994 = vmatmul.mubr.f32.gmra.mrb[18].mxu1 %v303_v28  ;;  %v159_v28 = vld [vmem:[%s4673_s2 + $0x450] sm:$0xff] }
  0xb9   :  { %1364 = vmatmul.mubr.f32.gmra.mrb[18].mxu0 %v307_v33  ;;  %999 = vmatprep.mubr.f32.mxu1 %v312_v34  ;;  %v163_v33 = vld [vmem:[%s4673_s2 + $0x470] sm:$0xff]  ;;  %v168_v34 = vld [vmem:[%s4673_s2 + $0x498] sm:$0xff]  ;;  %v367_v36 = vmul.f32 %v3107_v42, %v159_v28 }
  0xba   :  { %2158 = vmatprep.mubr.msk.f32.mxu0 %vm629_vm0, %v316_v35  ;;  %v172_v35 = vld [vmem:[%s4673_s2 + $0x4b8] sm:$0xff]  ;;  %v371_v37 = vmul.f32 %v3489_v3, %v163_v33  ;;  %v376_v38 = vmul.f32 %v3101_v40, %v168_v34 }
  0xbb   :  { %v380_v39 = vmul.f32 %v3104_v41, %v172_v35 }
  0xbc   :  { %1000 = vmatmul.mubr.f32.gmra.mrb[20].mxu1 %v311_v43  ;;  %v167_v43 = vld [vmem:[%s4673_s2 + $0x490] sm:$0xff] }
  0xbd   :  { %1370 = vmatmul.mubr.f32.gmra.mrb[20].mxu0 %v315_v44  ;;  %1005 = vmatprep.mubr.f32.mxu1 %v320_v45  ;;  %v171_v44 = vld [vmem:[%s4673_s2 + $0x4b0] sm:$0xff]  ;;  %v176_v45 = vld [vmem:[%s4673_s2 + $0x4d8] sm:$0xff]  ;;  %v375_v47 = vmul.f32 %v3107_v42, %v167_v43 }
  0xbe   :  { %2159 = vmatprep.mubr.msk.f32.mxu0 %vm629_vm0, %v324_v46  ;;  %v180_v46 = vld [vmem:[%s4673_s2 + $0x4f8] sm:$0xff]  ;;  %v379_v48 = vmul.f32 %v3489_v3, %v171_v44  ;;  %v384_v49 = vmul.f32 %v3101_v40, %v176_v45 }
  0xbf   :  { %v388_v50 = vmul.f32 %v3104_v41, %v180_v46 }
  0xc0   :  { %1006 = vmatmul.mubr.f32.gmra.mrb[22].mxu1 %v319_v51  ;;  %v175_v51 = vld [vmem:[%s4673_s2 + $0x4d0] sm:$0xff] }
  0xc1   :  { %1376 = vmatmul.mubr.f32.gmra.mrb[22].mxu0 %v323_v52  ;;  %1011 = vmatprep.mubr.f32.mxu1 %v328_v10  ;;  %v179_v52 = vld [vmem:[%s4673_s2 + $0x4f0] sm:$0xff]  ;;  %v383_v10 = vmul.f32 %v3107_v42, %v175_v51 }
  0xc2   :  { %2160 = vmatprep.mubr.msk.f32.mxu0 %vm629_vm0, %v332_v53  ;;  %v387_v53 = vmul.f32 %v3489_v3, %v179_v52 }
  0xc4   :  { %1012 = vmatmul.mubr.f32.gmra.mrb[24].mxu1 %v327_v58 }
  0xc5   :  { %1382 = vmatmul.mubr.f32.gmra.mrb[24].mxu0 %v331_v59  ;;  %1017 = vmatprep.mubr.f32.mxu1 %v336_v60 }
  0xc6   :  { %2161 = vmatprep.mubr.msk.f32.mxu0 %vm629_vm0, %v340_v61 }
  0xc8   :  { %1018 = vmatmul.mubr.f32.gmra.mrb[26].mxu1 %v335_v2 }
  0xc9   :  { %1388 = vmatmul.mubr.f32.gmra.mrb[26].mxu0 %v339_v4  ;;  %1023 = vmatprep.mubr.f32.mxu1 %v344_v5 }
  0xca   :  { %2162 = vmatprep.mubr.msk.f32.mxu0 %vm629_vm0, %v348_v6 }
  0xcc   :  { %1024 = vmatmul.mubr.f32.gmra.mrb[28].mxu1 %v343_v29 }
  0xcd   :  { %1394 = vmatmul.mubr.f32.gmra.mrb[28].mxu0 %v347_v30  ;;  %1029 = vmatprep.mubr.f32.mxu1 %v352_v11 }
  0xce   :  { %2163 = vmatprep.mubr.msk.f32.mxu0 %vm629_vm0, %v356_v12 }
  0xd0   :  { %1030 = vmatmul.mubr.f32.gmra.mrb[30].mxu1 %v351_v15 }
  0xd1   :  { %1400 = vmatmul.mubr.f32.gmra.mrb[30].mxu0 %v355_v16  ;;  %1035 = vmatprep.mubr.f32.mxu1 %v360_v17 }
  0xd2   :  { %2164 = vmatprep.mubr.msk.f32.mxu0 %vm629_vm0, %v364_v18 }
  0xd4   :  { %1036 = vmatmul.mubr.f32.gmra.mrb[32].mxu1 %v359_v23 }
  0xd5   :  { %1406 = vmatmul.mubr.f32.gmra.mrb[32].mxu0 %v363_v25  ;;  %1041 = vmatprep.mubr.f32.mxu1 %v368_v26 }
  0xd6   :  { %2165 = vmatprep.mubr.msk.f32.mxu0 %vm629_vm0, %v372_v27 }
  0xd8   :  { %1042 = vmatmul.mubr.f32.gmra.mrb[34].mxu1 %v367_v36 }
  0xd9   :  { %1412 = vmatmul.mubr.f32.gmra.mrb[34].mxu0 %v371_v37  ;;  %1047 = vmatprep.mubr.f32.mxu1 %v376_v38 }
  0xda   :  { %2166 = vmatprep.mubr.msk.f32.mxu0 %vm629_vm0, %v380_v39 }
  0xdc   :  { %1048 = vmatmul.mubr.f32.gmra.mrb[36].mxu1 %v375_v47 }
  0xdd   :  { %1418 = vmatmul.mubr.f32.gmra.mrb[36].mxu0 %v379_v48  ;;  %1053 = vmatprep.mubr.f32.mxu1 %v384_v49 }
  0xde   :  { %2167 = vmatprep.mubr.msk.f32.mxu0 %vm629_vm0, %v388_v50 }
  0xe0   :  { %1054 = vmatmul.mubr.f32.gmra.mrb[38].mxu1 %v383_v10 }
  0xe1   :  { %1424 = vmatmul.mubr.f32.gmra.mrb[38].mxu0 %v387_v53 }
 0x167   :  { %v941_v40 = vpop.f32.mrb[0].mxu1 }
 0x168   :  { %v1311_v41 = vpop.f32.mrb[0].mxu0  ;;  %v943_v55 = vpop.f32.mrb[1].mxu1 }
 0x169   :  { %v4058_v54 = vadd.f32 %v1311_v41, %v941_v40  ;;  %v1313_v56 = vpop.f32.mrb[1].mxu0 }
 0x16a   :  { %v4060_v57 = vadd.f32 %v1313_v56, %v943_v55 }
 0x16b   :  { %v947_v58 = vpop.f32.mrb[2].mxu1 }
 0x16c   :  { %v1317_v59 = vpop.f32.mrb[2].mxu0  ;;  %v1431_v42 = vsel %vm1430_vm1, %v4060_v57, 0.0  ;;  %v949_v60 = vpop.f32.mrb[3].mxu1 }
 0x16d   :  { %v4064_v3 = vadd.f32 %v1317_v59, %v947_v58  ;;  %v1319_v61 = vpop.f32.mrb[3].mxu0  ;;  %v1432_v62 = vadd.f32 %v4058_v54, %v1431_v42 }
 0x16e   :  { %v4067_v63 = vadd.f32 %v1319_v61, %v949_v60 }
 0x16f   :  { %1433 = vadd.xlane.f32.xlu0 %v1432_v62  ;;  %v953_v0 = vpop.f32.mrb[4].mxu1 }
 0x170   :  { %v1323_v1 = vpop.f32.mrb[4].mxu0  ;;  %v1435_v2 = vsel %vm1430_vm1, %v4067_v63, 0.0  ;;  %v955_v5 = vpop.f32.mrb[5].mxu1 }
 0x171   :  { %v4071_v4 = vadd.f32 %v1323_v1, %v953_v0  ;;  %v1325_v6 = vpop.f32.mrb[5].mxu0  ;;  %v1436_v7 = vadd.f32 %v4064_v3, %v1435_v2 }
 0x172   :  { %v4074_v8 = vadd.f32 %v1325_v6, %v955_v5 }
 0x173   :  { %1437 = vadd.xlane.f32.xlu0 %v1436_v7  ;;  %v959_v24 = vpop.f32.mrb[6].mxu1 }
 0x174   :  { %v1329_v9 = vpop.f32.mrb[6].mxu0  ;;  %v1439_v29 = vsel %vm1430_vm1, %v4074_v8, 0.0  ;;  %v961_v11 = vpop.f32.mrb[7].mxu1 }
 0x175   :  { %v4078_v30 = vadd.f32 %v1329_v9, %v959_v24  ;;  %v1331_v12 = vpop.f32.mrb[7].mxu0  ;;  %v1440_v13 = vadd.f32 %v4071_v4, %v1439_v29 }
 0x176   :  { %v4081_v14 = vadd.f32 %v1331_v12, %v961_v11 }
 0x177   :  { %1441 = vadd.xlane.f32.xlu1 %v1440_v13  ;;  %v965_v31 = vpop.f32.mrb[8].mxu1 }
 0x178   :  { %v1335_v32 = vpop.f32.mrb[8].mxu0  ;;  %v1443_v15 = vsel %vm1430_vm1, %v4081_v14, 0.0  ;;  %v967_v17 = vpop.f32.mrb[9].mxu1 }
 0x179   :  { %v4085_v16 = vadd.f32 %v1335_v32, %v965_v31  ;;  %v1337_v18 = vpop.f32.mrb[9].mxu0  ;;  %v1444_v19 = vadd.f32 %v4078_v30, %v1443_v15 }
 0x17a   :  { %v4088_v20 = vadd.f32 %v1337_v18, %v967_v17 }
 0x17b   :  { %1445 = vadd.xlane.f32.xlu1 %v1444_v19  ;;  %v971_v21 = vpop.f32.mrb[10].mxu1 }
 0x17c   :  { %v1341_v22 = vpop.f32.mrb[10].mxu0  ;;  %v1447_v23 = vsel %vm1430_vm1, %v4088_v20, 0.0  ;;  %v973_v26 = vpop.f32.mrb[11].mxu1 }
 0x17d   :  { %v4092_v25 = vadd.f32 %v1341_v22, %v971_v21  ;;  %v1343_v27 = vpop.f32.mrb[11].mxu0  ;;  %v1448_v28 = vadd.f32 %v4085_v16, %v1447_v23 }
 0x17e   :  { %v4095_v33 = vadd.f32 %v1343_v27, %v973_v26 }
 0x17f   :  { %1449 = vadd.xlane.f32.xlu0 %v1448_v28  ;;  %v977_v34 = vpop.f32.mrb[12].mxu1 }
 0x180   :  { %v1347_v35 = vpop.f32.mrb[12].mxu0  ;;  %v1451_v36 = vsel %vm1430_vm1, %v4095_v33, 0.0  ;;  %v979_v38 = vpop.f32.mrb[13].mxu1 }
 0x181   :  { %v4099_v37 = vadd.f32 %v1347_v35, %v977_v34  ;;  %v1349_v39 = vpop.f32.mrb[13].mxu0  ;;  %v1452_v43 = vadd.f32 %v4092_v25, %v1451_v36 }
 0x182   :  { %v4102_v44 = vadd.f32 %v1349_v39, %v979_v38 }
 0x183   :  { %1453 = vadd.xlane.f32.xlu1 %v1452_v43  ;;  %v983_v45 = vpop.f32.mrb[14].mxu1 }
 0x184   :  { %v1353_v46 = vpop.f32.mrb[14].mxu0  ;;  %v1455_v47 = vsel %vm1430_vm1, %v4102_v44, 0.0  ;;  %v985_v49 = vpop.f32.mrb[15].mxu1 }
 0x185   :  { %v4106_v48 = vadd.f32 %v1353_v46, %v983_v45  ;;  %v1355_v50 = vpop.f32.mrb[15].mxu0  ;;  %v1456_v51 = vadd.f32 %v4099_v37, %v1455_v47 }
 0x186   :  { %v4109_v52 = vadd.f32 %v1355_v50, %v985_v49 }
 0x187   :  { %1457 = vadd.xlane.f32.xlu0 %v1456_v51  ;;  %v989_v10 = vpop.f32.mrb[16].mxu1 }
 0x188   :  { %v1359_v53 = vpop.f32.mrb[16].mxu0  ;;  %v1459_v40 = vsel %vm1430_vm1, %v4109_v52, 0.0  ;;  %v991_v55 = vpop.f32.mrb[17].mxu1 }
 0x189   :  { %v4113_v41 = vadd.f32 %v1359_v53, %v989_v10  ;;  %v1361_v56 = vpop.f32.mrb[17].mxu0  ;;  %v1460_v58 = vadd.f32 %v4106_v48, %v1459_v40 }
 0x18a   :  { %v4116_v59 = vadd.f32 %v1361_v56, %v991_v55 }
 0x18b   :  { %1461 = vadd.xlane.f32.xlu1 %v1460_v58  ;;  %v995_v42 = vpop.f32.mrb[18].mxu1 }
 0x18c   :  { %v1365_v60 = vpop.f32.mrb[18].mxu0  ;;  %v1463_v61 = vsel %vm1430_vm1, %v4116_v59, 0.0  ;;  %v997_v0 = vpop.f32.mrb[19].mxu1 }
 0x18d   :  { %v4120_v62 = vadd.f32 %v1365_v60, %v995_v42  ;;  %v1367_v1 = vpop.f32.mrb[19].mxu0  ;;  %v1464_v2 = vadd.f32 %v4113_v41, %v1463_v61 }
 0x18e   :  { %v4123_v5 = vadd.f32 %v1367_v1, %v997_v0 }
 0x18f   :  { %1465 = vadd.xlane.f32.xlu0 %v1464_v2  ;;  %v1001_v6 = vpop.f32.mrb[20].mxu1 }
 0x190   :  { %v1371_v7 = vpop.f32.mrb[20].mxu0  ;;  %v1467_v24 = vsel %vm1430_vm1, %v4123_v5, 0.0  ;;  %v1003_v29 = vpop.f32.mrb[21].mxu1 }
 0x191   :  { %v4127_v9 = vadd.f32 %v1371_v7, %v1001_v6  ;;  %v1373_v11 = vpop.f32.mrb[21].mxu0  ;;  %v1468_v12 = vadd.f32 %v4120_v62, %v1467_v24 }
 0x192   :  { %v4130_v13 = vadd.f32 %v1373_v11, %v1003_v29 }
 0x193   :  { %1469 = vadd.xlane.f32.xlu1 %v1468_v12  ;;  %v1007_v31 = vpop.f32.mrb[22].mxu1 }
 0x194   :  { %v1377_v32 = vpop.f32.mrb[22].mxu0  ;;  %v1471_v15 = vsel %vm1430_vm1, %v4130_v13, 0.0  ;;  %v1009_v18 = vpop.f32.mrb[23].mxu1 }
 0x195   :  { %v4134_v17 = vadd.f32 %v1377_v32, %v1007_v31  ;;  %v1379_v19 = vpop.f32.mrb[23].mxu0  ;;  %v1472_v21 = vadd.f32 %v4127_v9, %v1471_v15 }
 0x196   :  { %v4137_v22 = vadd.f32 %v1379_v19, %v1009_v18 }
 0x197   :  { %1473 = vadd.xlane.f32.xlu0 %v1472_v21  ;;  %v1013_v23 = vpop.f32.mrb[24].mxu1 }
 0x198   :  { %v1383_v26 = vpop.f32.mrb[24].mxu0  ;;  %v1475_v27 = vsel %vm1430_vm1, %v4137_v22, 0.0  ;;  %v1015_v34 = vpop.f32.mrb[25].mxu1 }
 0x199   :  { %v4141_v28 = vadd.f32 %v1383_v26, %v1013_v23  ;;  %v1385_v35 = vpop.f32.mrb[25].mxu0  ;;  %v1476_v36 = vadd.f32 %v4134_v17, %v1475_v27 }
 0x19a   :  { %v4144_v38 = vadd.f32 %v1385_v35, %v1015_v34 }
 0x19b   :  { %1477 = vadd.xlane.f32.xlu1 %v1476_v36  ;;  %v1019_v39 = vpop.f32.mrb[26].mxu1 }
 0x19c   :  { %v1389_v43 = vpop.f32.mrb[26].mxu0  ;;  %v1479_v45 = vsel %vm1430_vm1, %v4144_v38, 0.0  ;;  %v1021_v47 = vpop.f32.mrb[27].mxu1 }
 0x19d   :  { %v4148_v46 = vadd.f32 %v1389_v43, %v1019_v39  ;;  %v1391_v49 = vpop.f32.mrb[27].mxu0  ;;  %v1480_v50 = vadd.f32 %v4141_v28, %v1479_v45 }
 0x19e   :  { %v4151_v51 = vadd.f32 %v1391_v49, %v1021_v47 }
 0x19f   :  { %1481 = vadd.xlane.f32.xlu0 %v1480_v50  ;;  %v1025_v10 = vpop.f32.mrb[28].mxu1 }
 0x1a0   :  { %v1395_v53 = vpop.f32.mrb[28].mxu0  ;;  %v1483_v40 = vsel %vm1430_vm1, %v4151_v51, 0.0  ;;  %v1027_v56 = vpop.f32.mrb[29].mxu1 }
 0x1a1   :  { %v4155_v55 = vadd.f32 %v1395_v53, %v1025_v10  ;;  %v1397_v58 = vpop.f32.mrb[29].mxu0  ;;  %v1484_v42 = vadd.f32 %v4148_v46, %v1483_v40 }
 0x1a2   :  { %v4158_v60 = vadd.f32 %v1397_v58, %v1027_v56 }
 0x1a3   :  { %1485 = vadd.xlane.f32.xlu1 %v1484_v42  ;;  %v1031_v61 = vpop.f32.mrb[30].mxu1 }
 0x1a4   :  { %v1401_v0 = vpop.f32.mrb[30].mxu0  ;;  %v1487_v1 = vsel %vm1430_vm1, %v4158_v60, 0.0  ;;  %v1033_v6 = vpop.f32.mrb[31].mxu1 }
 0x1a5   :  { %v4162_v2 = vadd.f32 %v1401_v0, %v1031_v61  ;;  %v1403_v7 = vpop.f32.mrb[31].mxu0  ;;  %v1488_v24 = vadd.f32 %v4155_v55, %v1487_v1 }
 0x1a6   :  { %v4165_v29 = vadd.f32 %v1403_v7, %v1033_v6 }
 0x1a7   :  { %1489 = vadd.xlane.f32.xlu0 %v1488_v24  ;;  %v1037_v11 = vpop.f32.mrb[32].mxu1 }
 0x1a8   :  { %v1407_v12 = vpop.f32.mrb[32].mxu0  ;;  %v1491_v31 = vsel %vm1430_vm1, %v4165_v29, 0.0  ;;  %v1039_v15 = vpop.f32.mrb[33].mxu1 }
 0x1a9   :  { %v4169_v32 = vadd.f32 %v1407_v12, %v1037_v11  ;;  %v1409_v18 = vpop.f32.mrb[33].mxu0  ;;  %v1492_v19 = vadd.f32 %v4162_v2, %v1491_v31  ;;  %v1933_v11 = vld [vmem:[%s4675_s4 + $0x10] sm:$0xff]  ;;  %v1932_v12 = vld [vmem:[%s4675_s4 + $0x8] sm:$0xff] }
 0x1aa   :  { %v4172_v21 = vadd.f32 %v1409_v18, %v1039_v15 }
 0x1ab   :  { %1493 = vadd.xlane.f32.xlu1 %v1492_v19  ;;  %v1043_v23 = vpop.f32.mrb[34].mxu1 }
 0x1ac   :  { %v1413_v26 = vpop.f32.mrb[34].mxu0  ;;  %v1495_v27 = vsel %vm1430_vm1, %v4172_v21, 0.0  ;;  %v1045_v35 = vpop.f32.mrb[35].mxu1 }
 0x1ad   :  { %v4176_v34 = vadd.f32 %v1413_v26, %v1043_v23  ;;  %v1415_v36 = vpop.f32.mrb[35].mxu0  ;;  %v1496_v39 = vadd.f32 %v4169_v32, %v1495_v27  ;;  %v4210_v27 = vpop.permute.xlu1 %1953 }
 0x1ae   :  { %v4179_v43 = vadd.f32 %v1415_v36, %v1045_v35 }
 0x1af   :  { %1497 = vadd.xlane.f32.xlu0 %v1496_v39  ;;  %v1049_v45 = vpop.f32.mrb[36].mxu1 }
 0x1b0   :  { %v1419_v47 = vpop.f32.mrb[36].mxu0  ;;  %v1499_v49 = vsel %vm1430_vm1, %v4179_v43, 0.0  ;;  %v1051_v10 = vpop.f32.mrb[37].mxu1 }
 0x1b1   :  { %v4183_v50 = vadd.f32 %v1419_v47, %v1049_v45  ;;  %v1421_v53 = vpop.f32.mrb[37].mxu0  ;;  %v1500_v40 = vadd.f32 %v4176_v34, %v1499_v49 }
 0x1b2   :  { %v4186_v56 = vadd.f32 %v1421_v53, %v1051_v10 }
 0x1b3   :  { %1501 = vadd.xlane.f32.xlu1 %v1500_v40  ;;  %v1055_v58 = vpop.f32.mrb[38].mxu1 }
 0x1b4   :  { %v1425_v42 = vpop.f32.mrb[38].mxu0  ;;  %v1503_v61 = vsel %vm1430_vm1, %v4186_v56, 0.0  ;;  %v1057_v1 = vpop.f32.mrb[39].mxu1 }
 0x1b5   :  { %v4190_v0 = vadd.f32 %v1425_v42, %v1055_v58  ;;  %v1427_v6 = vpop.f32.mrb[39].mxu0  ;;  %v1504_v7 = vadd.f32 %v4183_v50, %v1503_v61 }
 0x1b6   :  { %v4193_v24 = vadd.f32 %v1427_v6, %v1057_v1 }
 0x1b7   :  { %1505 = vadd.xlane.f32.xlu0 %v1504_v7 }
 0x1b8   :  { %v1507_v31 = vsel %vm1430_vm1, %v4193_v24, 0.0 }
 0x1b9   :  { %v1508_v15 = vadd.f32 %v4190_v0, %v1507_v31 }
 0x1c4   :  { %1963 = vperm.xlu1 %2532, %v1933_v11  }
 0x1cd   :  { %1958 = vperm.xlu0 %2533, %v1932_v12  }
 0x1e8   :  { %1509 = vadd.xlane.f32.xlu1 %v1508_v15 }
 0x1fc   :  { %v1434_v18 = vpop.xlane.xlu0 %1433 }
 0x1fd   :  { %v1511_v19 = vmul.f32 0.0051020407, %v1434_v18 }
 0x1ff   :  { %v4205_v23 = vsub.f32 %v4058_v54, %v1511_v19  ;;  %v4208_v26 = vsub.f32 %v4060_v57, %v1511_v19 }
 0x200   :  { %v1438_v35 = vpop.xlane.xlu0 %1437 }
 0x201   :  { %v1512_v36 = vmul.f32 0.0051020407, %v1438_v35  ;;  %v1571_v39 = vmul.f32 %v4205_v23, %v4205_v23  ;;  %v1572_v45 = vmul.f32 %v4208_v26, %v4208_v26 }
 0x203   :  { %v4217_v47 = vsub.f32 %v4064_v3, %v1512_v36  ;;  %v4220_v49 = vsub.f32 %v4067_v63, %v1512_v36  ;;  %v1611_v54 = vsel %vm1430_vm1, %v1572_v45, 0.0 }
 0x204   :  { %v1442_v57 = vpop.xlane.xlu1 %1441  ;;  %v1612_v10 = vadd.f32 %v1611_v54, %v1571_v39 }
 0x205   :  { %v1513_v53 = vmul.f32 0.0051020407, %v1442_v57  ;;  %v1573_v40 = vmul.f32 %v4217_v47, %v4217_v47  ;;  %v1574_v58 = vmul.f32 %v4220_v49, %v4220_v49 }
 0x206   :  { %1613 = vadd.xlane.f32.xlu0 %v1612_v10 }
 0x207   :  { %v4228_v42 = vsub.f32 %v4071_v4, %v1513_v53  ;;  %v4231_v3 = vsub.f32 %v4074_v8, %v1513_v53  ;;  %v1615_v63 = vsel %vm1430_vm1, %v1574_v58, 0.0 }
 0x208   :  { %v1446_v61 = vpop.xlane.xlu1 %1445  ;;  %v1616_v1 = vadd.f32 %v1615_v63, %v1573_v40 }
 0x209   :  { %v1514_v6 = vmul.f32 0.0051020407, %v1446_v61  ;;  %v1575_v7 = vmul.f32 %v4228_v42, %v4228_v42  ;;  %v1576_v11 = vmul.f32 %v4231_v3, %v4231_v3 }
 0x20a   :  { %1617 = vadd.xlane.f32.xlu1 %v1616_v1 }
 0x20b   :  { %v4239_v12 = vsub.f32 %v4078_v30, %v1514_v6  ;;  %v4242_v4 = vsub.f32 %v4081_v14, %v1514_v6  ;;  %v1619_v8 = vsel %vm1430_vm1, %v1576_v11, 0.0 }
 0x20c   :  { %v1450_v31 = vpop.xlane.xlu0 %1449  ;;  %v1620_v15 = vadd.f32 %v1619_v8, %v1575_v7 }
 0x20d   :  { %v1515_v18 = vmul.f32 0.0051020407, %v1450_v31  ;;  %v1577_v19 = vmul.f32 %v4239_v12, %v4239_v12  ;;  %v1578_v35 = vmul.f32 %v4242_v4, %v4242_v4 }
 0x20e   :  { %1621 = vadd.xlane.f32.xlu0 %v1620_v15 }
 0x20f   :  { %v4250_v36 = vsub.f32 %v4085_v16, %v1515_v18  ;;  %v4253_v30 = vsub.f32 %v4088_v20, %v1515_v18  ;;  %v1623_v14 = vsel %vm1430_vm1, %v1578_v35, 0.0 }
 0x210   :  { %v1454_v39 = vpop.xlane.xlu1 %1453  ;;  %v1624_v45 = vadd.f32 %v1623_v14, %v1577_v19 }
 0x211   :  { %v1516_v54 = vmul.f32 0.0051020407, %v1454_v39  ;;  %v1579_v57 = vmul.f32 %v4250_v36, %v4250_v36  ;;  %v1580_v10 = vmul.f32 %v4253_v30, %v4253_v30 }
 0x212   :  { %1625 = vadd.xlane.f32.xlu1 %v1624_v45 }
 0x213   :  { %v4261_v53 = vsub.f32 %v4092_v25, %v1516_v54  ;;  %v4264_v16 = vsub.f32 %v4095_v33, %v1516_v54  ;;  %v1627_v20 = vsel %vm1430_vm1, %v1580_v10, 0.0 }
 0x214   :  { %v1458_v40 = vpop.xlane.xlu0 %1457  ;;  %v1628_v58 = vadd.f32 %v1627_v20, %v1579_v57 }
 0x215   :  { %v1517_v63 = vmul.f32 0.0051020407, %v1458_v40  ;;  %v1581_v61 = vmul.f32 %v4261_v53, %v4261_v53  ;;  %v1582_v1 = vmul.f32 %v4264_v16, %v4264_v16 }
 0x216   :  { %1629 = vadd.xlane.f32.xlu0 %v1628_v58 }
 0x217   :  { %v4272_v6 = vsub.f32 %v4099_v37, %v1517_v63  ;;  %v4275_v25 = vsub.f32 %v4102_v44, %v1517_v63  ;;  %v1631_v33 = vsel %vm1430_vm1, %v1582_v1, 0.0 }
 0x218   :  { %v1462_v7 = vpop.xlane.xlu1 %1461  ;;  %v1632_v11 = vadd.f32 %v1631_v33, %v1581_v61 }
 0x219   :  { %v1518_v8 = vmul.f32 0.0051020407, %v1462_v7  ;;  %v1583_v31 = vmul.f32 %v4272_v6, %v4272_v6  ;;  %v1584_v15 = vmul.f32 %v4275_v25, %v4275_v25 }
 0x21a   :  { %1633 = vadd.xlane.f32.xlu1 %v1632_v11 }
 0x21b   :  { %v4283_v18 = vsub.f32 %v4106_v48, %v1518_v8  ;;  %v4286_v37 = vsub.f32 %v4109_v52, %v1518_v8  ;;  %v1635_v44 = vsel %vm1430_vm1, %v1584_v15, 0.0 }
 0x21c   :  { %v1466_v19 = vpop.xlane.xlu0 %1465  ;;  %v1636_v35 = vadd.f32 %v1635_v44, %v1583_v31 }
 0x21d   :  { %v1519_v14 = vmul.f32 0.0051020407, %v1466_v19  ;;  %v1585_v39 = vmul.f32 %v4283_v18, %v4283_v18  ;;  %v1586_v45 = vmul.f32 %v4286_v37, %v4286_v37 }
 0x21e   :  { %1637 = vadd.xlane.f32.xlu0 %v1636_v35 }
 0x21f   :  { %v4294_v54 = vsub.f32 %v4113_v41, %v1519_v14  ;;  %v4297_v48 = vsub.f32 %v4116_v59, %v1519_v14  ;;  %v1639_v52 = vsel %vm1430_vm1, %v1586_v45, 0.0 }
 0x220   :  { %v1470_v57 = vpop.xlane.xlu1 %1469  ;;  %v1640_v10 = vadd.f32 %v1639_v52, %v1585_v39 }
 0x221   :  { %v1520_v20 = vmul.f32 0.0051020407, %v1470_v57  ;;  %v1587_v40 = vmul.f32 %v4294_v54, %v4294_v54  ;;  %v1588_v58 = vmul.f32 %v4297_v48, %v4297_v48 }
 0x222   :  { %1641 = vadd.xlane.f32.xlu1 %v1640_v10 }
 0x223   :  { %v4305_v63 = vsub.f32 %v4120_v62, %v1520_v20  ;;  %v4308_v41 = vsub.f32 %v4123_v5, %v1520_v20  ;;  %v1643_v59 = vsel %vm1430_vm1, %v1588_v58, 0.0 }
 0x224   :  { %v1474_v61 = vpop.xlane.xlu0 %1473  ;;  %v1644_v1 = vadd.f32 %v1643_v59, %v1587_v40 }
 0x225   :  { %v1521_v33 = vmul.f32 0.0051020407, %v1474_v61  ;;  %v1589_v7 = vmul.f32 %v4305_v63, %v4305_v63  ;;  %v1590_v11 = vmul.f32 %v4308_v41, %v4308_v41 }
 0x226   :  { %1645 = vadd.xlane.f32.xlu0 %v1644_v1 }
 0x227   :  { %v4316_v8 = vsub.f32 %v4127_v9, %v1521_v33  ;;  %v4319_v62 = vsub.f32 %v4130_v13, %v1521_v33  ;;  %v1647_v5 = vsel %vm1430_vm1, %v1590_v11, 0.0 }
 0x228   :  { %v1478_v31 = vpop.xlane.xlu1 %1477  ;;  %v1648_v15 = vadd.f32 %v1647_v5, %v1589_v7 }
 0x229   :  { %v1522_v44 = vmul.f32 0.0051020407, %v1478_v31  ;;  %v1591_v19 = vmul.f32 %v4316_v8, %v4316_v8  ;;  %v1592_v35 = vmul.f32 %v4319_v62, %v4319_v62 }
 0x22a   :  { %1649 = vadd.xlane.f32.xlu1 %v1648_v15 }
 0x22b   :  { %v4327_v14 = vsub.f32 %v4134_v17, %v1522_v44  ;;  %v4330_v9 = vsub.f32 %v4137_v22, %v1522_v44  ;;  %v1651_v13 = vsel %vm1430_vm1, %v1592_v35, 0.0 }
 0x22c   :  { %v1482_v39 = vpop.xlane.xlu0 %1481  ;;  %v1652_v45 = vadd.f32 %v1651_v13, %v1591_v19 }
 0x22d   :  { %v1523_v52 = vmul.f32 0.0051020407, %v1482_v39  ;;  %v1593_v57 = vmul.f32 %v4327_v14, %v4327_v14  ;;  %v1594_v10 = vmul.f32 %v4330_v9, %v4330_v9 }
 0x22e   :  { %1653 = vadd.xlane.f32.xlu0 %v1652_v45 }
 0x22f   :  { %v4338_v20 = vsub.f32 %v4141_v28, %v1523_v52  ;;  %v4341_v17 = vsub.f32 %v4144_v38, %v1523_v52  ;;  %v1655_v22 = vsel %vm1430_vm1, %v1594_v10, 0.0 }
 0x230   :  { %v1486_v40 = vpop.xlane.xlu1 %1485  ;;  %v1656_v58 = vadd.f32 %v1655_v22, %v1593_v57 }
 0x231   :  { %v1524_v59 = vmul.f32 0.0051020407, %v1486_v40  ;;  %v1595_v61 = vmul.f32 %v4338_v20, %v4338_v20  ;;  %v1596_v1 = vmul.f32 %v4341_v17, %v4341_v17 }
 0x232   :  { %1657 = vadd.xlane.f32.xlu1 %v1656_v58 }
 0x233   :  { %v4349_v33 = vsub.f32 %v4148_v46, %v1524_v59  ;;  %v4352_v28 = vsub.f32 %v4151_v51, %v1524_v59  ;;  %v1659_v38 = vsel %vm1430_vm1, %v1596_v1, 0.0 }
 0x234   :  { %v1490_v7 = vpop.xlane.xlu0 %1489  ;;  %v1660_v11 = vadd.f32 %v1659_v38, %v1595_v61 }
 0x235   :  { %v1525_v5 = vmul.f32 0.0051020407, %v1490_v7  ;;  %v1597_v31 = vmul.f32 %v4349_v33, %v4349_v33  ;;  %v1598_v15 = vmul.f32 %v4352_v28, %v4352_v28 }
 0x236   :  { %1661 = vadd.xlane.f32.xlu0 %v1660_v11 }
 0x237   :  { %v4360_v44 = vsub.f32 %v4155_v55, %v1525_v5  ;;  %v4363_v46 = vsub.f32 %v4158_v60, %v1525_v5  ;;  %v1663_v51 = vsel %vm1430_vm1, %v1598_v15, 0.0 }
 0x238   :  { %v1494_v19 = vpop.xlane.xlu1 %1493  ;;  %v1664_v35 = vadd.f32 %v1663_v51, %v1597_v31 }
 0x239   :  { %v1526_v13 = vmul.f32 0.0051020407, %v1494_v19  ;;  %v1599_v39 = vmul.f32 %v4360_v44, %v4360_v44  ;;  %v1600_v45 = vmul.f32 %v4363_v46, %v4363_v46 }
 0x23a   :  { %1665 = vadd.xlane.f32.xlu1 %v1664_v35 }
 0x23b   :  { %v4371_v52 = vsub.f32 %v4162_v2, %v1526_v13  ;;  %v4374_v55 = vsub.f32 %v4165_v29, %v1526_v13  ;;  %v1667_v60 = vsel %vm1430_vm1, %v1600_v45, 0.0 }
 0x23c   :  { %v1498_v57 = vpop.xlane.xlu0 %1497  ;;  %v1668_v10 = vadd.f32 %v1667_v60, %v1599_v39 }
 0x23d   :  { %v1527_v22 = vmul.f32 0.0051020407, %v1498_v57  ;;  %v1601_v40 = vmul.f32 %v4371_v52, %v4371_v52  ;;  %v1602_v58 = vmul.f32 %v4374_v55, %v4374_v55 }
 0x23e   :  { %1669 = vadd.xlane.f32.xlu0 %v1668_v10 }
 0x23f   :  { %v4382_v59 = vsub.f32 %v4169_v32, %v1527_v22  ;;  %v4385_v2 = vsub.f32 %v4172_v21, %v1527_v22  ;;  %v1671_v29 = vsel %vm1430_vm1, %v1602_v58, 0.0  ;;  %v1939_v22 = vld [vmem:[%s4675_s4 + $0x40] sm:$0xff]  ;;  %v1941_v58 = vld [vmem:[%s4675_s4 + $0x50] sm:$0xff] }
 0x240   :  { %v1502_v61 = vpop.xlane.xlu1 %1501  ;;  %v1672_v1 = vadd.f32 %v1671_v29, %v1601_v40  ;;  %v1934_v40 = vld [vmem:[%s4675_s4 + $0x18] sm:$0xff]  ;;  %v1936_v29 = vld [vmem:[%s4675_s4 + $0x28] sm:$0xff] }
 0x241   :  { %v1528_v38 = vmul.f32 0.0051020407, %v1502_v61  ;;  %v1603_v7 = vmul.f32 %v4382_v59, %v4382_v59  ;;  %v1604_v11 = vmul.f32 %v4385_v2, %v4385_v2  ;;  %v1943_v61 = vld [vmem:[%s4675_s4 + $0x60] sm:$0xff] }
 0x242   :  { %1673 = vadd.xlane.f32.xlu1 %v1672_v1  ;;  %v1938_v1 = vld [vmem:[%s4675_s4 + $0x38] sm:$0xff] }
 0x243   :  { %v4393_v5 = vsub.f32 %v4176_v34, %v1528_v38  ;;  %v4396_v32 = vsub.f32 %v4179_v43, %v1528_v38  ;;  %v1675_v21 = vsel %vm1430_vm1, %v1604_v11, 0.0  ;;  %v1945_v38 = vld [vmem:[%s4675_s4 + $0x70] sm:$0xff]  ;;  %v1942_v11 = vld [vmem:[%s4675_s4 + $0x58] sm:$0xff] }
 0x244   :  { %v1506_v31 = vpop.xlane.xlu0 %1505  ;;  %v1676_v15 = vadd.f32 %v1675_v21, %v1603_v7  ;;  %v1940_v7 = vld [vmem:[%s4675_s4 + $0x48] sm:$0xff] }
 0x245   :  { %v1529_v51 = vmul.f32 0.0051020407, %v1506_v31  ;;  %v1605_v19 = vmul.f32 %v4393_v5, %v4393_v5  ;;  %v1606_v35 = vmul.f32 %v4396_v32, %v4396_v32  ;;  %v1944_v21 = vld [vmem:[%s4675_s4 + $0x68] sm:$0xff]  ;;  %v1946_v31 = vld [vmem:[%s4675_s4 + $0x78] sm:$0xff] }
 0x246   :  { %1677 = vadd.xlane.f32.xlu0 %v1676_v15  ;;  %v4454_v15 = vpop.permute.xlu1 %1963 }
 0x247   :  { %v4404_v13 = vsub.f32 %v4183_v50, %v1529_v51  ;;  %v4407_v34 = vsub.f32 %v4186_v56, %v1529_v51  ;;  %v1679_v43 = vsel %vm1430_vm1, %v1606_v35, 0.0  ;;  %v1935_v50 = vld [vmem:[%s4675_s4 + $0x20] sm:$0xff]  ;;  %v1937_v56 = vld [vmem:[%s4675_s4 + $0x30] sm:$0xff]  ;;  %v1948_v51 = vld [vmem:[%s4675_s4 + $0x88] sm:$0xff] }
 0x248   :  { %v1680_v39 = vadd.f32 %v1679_v43, %v1605_v19 }
 0x249   :  { %4682 = vst [vmem:[#allocation5_spill] sm:$0xff] %v4404_v13  ;;  %4683 = vst [vmem:[#allocation6_spill] sm:$0xff] %v4407_v34  ;;  %v1607_v45 = vmul.f32 %v4404_v13, %v4404_v13  ;;  %v1608_v60 = vmul.f32 %v4407_v34, %v4407_v34 }
 0x24a   :  { %1681 = vadd.xlane.f32.xlu1 %v1680_v39 }
 0x24b   :  { %v1683_v57 = vsel %vm1430_vm1, %v1608_v60, 0.0 }
 0x24c   :  { %v1684_v10 = vadd.f32 %v1683_v57, %v1607_v45  ;;  %v4467_v60 = vpop.permute.xlu0 %1958 }
 0x24e   :  { %1685 = vadd.xlane.f32.xlu0 %v1684_v10 }
 0x25b   :  { %1973 = vperm.xlu1 %2532, %v1935_v50  }
 0x25f   :  { %1983 = vperm.xlu1 %2532, %v1937_v56  }
 0x263   :  { %1993 = vperm.xlu1 %2532, %v1939_v22  }
 0x264   :  { %1968 = vperm.xlu0 %2533, %v1934_v40  }
 0x267   :  { %2003 = vperm.xlu1 %2532, %v1941_v58  }
 0x268   :  { %1978 = vperm.xlu0 %2533, %v1936_v29  }
 0x26b   :  { %2013 = vperm.xlu1 %2532, %v1943_v61  }
 0x26c   :  { %1988 = vperm.xlu0 %2533, %v1938_v1  }
 0x26f   :  { %2023 = vperm.xlu1 %2532, %v1945_v38  }
 0x270   :  { %1998 = vperm.xlu0 %2533, %v1940_v7  }
 0x274   :  { %2008 = vperm.xlu0 %2533, %v1942_v11   ;;  %v1711_v11 = vld [vmem:[%s4674_s3] sm:$0xff] }
 0x275   :  { %v1510_v19 = vpop.xlane.xlu1 %1509 }
 0x276   :  { %v1530_v35 = vmul.f32 0.0051020407, %v1510_v19 }
 0x278   :  { %2018 = vperm.xlu0 %2533, %v1944_v21   ;;  %v4460_v43 = vsub.f32 %v4193_v24, %v1530_v35  ;;  %v4463_v39 = vsub.f32 %v4190_v0, %v1530_v35  ;;  %v1947_v21 = vld [vmem:[%s4675_s4 + $0x80] sm:$0xff] }
 0x27a   :  { %4684 = vst [vmem:[#allocation7_spill] sm:$0xff] %v4460_v43  ;;  %4685 = vst [vmem:[#allocation8_spill] sm:$0xff] %v4463_v39  ;;  %v1610_v45 = vmul.f32 %v4460_v43, %v4460_v43  ;;  %v1609_v57 = vmul.f32 %v4463_v39, %v4463_v39 }
 0x27c   :  { %2028 = vperm.xlu0 %2533, %v1946_v31   ;;  %v1687_v10 = vsel %vm1430_vm1, %v1610_v45, 0.0 }
 0x27d   :  { %v1688_v50 = vadd.f32 %v1687_v10, %v1609_v57  ;;  %v1712_v57 = vld [vmem:[%s4674_s3 + $0x8] sm:$0xff] }
 0x280   :  { %2038 = vperm.xlu0 %2533, %v1948_v51  }
 0x293   :  { %v1614_v56 = vpop.xlane.xlu0 %1613  ;;  %1689 = vadd.xlane.f32.xlu1 %v1688_v50 }
 0x294   :  { %v1691_v22 = vmul.f32 0.0051020407, %v1614_v56 }
 0x296   :  { %v1731_v40 = vadd.f32 1e-05, %v1691_v22 }
 0x297   :  { %v1618_v24 = vpop.xlane.xlu1 %1617 }
 0x298   :  { %2538 = vrsqrt.f32 %v1731_v40  ;;  %v1692_v58 = vmul.f32 0.0051020407, %v1618_v24  ;;  %v1713_v24 = vld [vmem:[%s4674_s3 + $0x10] sm:$0xff] }
 0x29a   :  { %v1732_v0 = vadd.f32 1e-05, %v1692_v58 }
 0x29b   :  { %v1622_v29 = vpop.xlane.xlu0 %1621 }
 0x29c   :  { %2540 = vrsqrt.f32 %v1732_v0  ;;  %v1693_v61 = vmul.f32 0.0051020407, %v1622_v29 }
 0x29e   :  { %v1733_v1 = vadd.f32 1e-05, %v1693_v61 }
 0x29f   :  { %v1626_v38 = vpop.xlane.xlu1 %1625 }
 0x2a0   :  { %2542 = vrsqrt.f32 %v1733_v1  ;;  %v1694_v7 = vmul.f32 0.0051020407, %v1626_v38  ;;  %v1714_v38 = vld [vmem:[%s4674_s3 + $0x18] sm:$0xff] }
 0x2a2   :  { %v2539_v31 = vpop.eup %2538  ;;  %v1734_v51 = vadd.f32 1e-05, %v1694_v7 }
 0x2a3   :  { %v1630_v19 = vpop.xlane.xlu0 %1629  ;;  %v1771_v35 = vmul.f32 %v2539_v31, %v1711_v11 }
 0x2a4   :  { %2544 = vrsqrt.f32 %v1734_v51  ;;  %v1695_v45 = vmul.f32 0.0051020407, %v1630_v19  ;;  %2033 = vperm.xlu1 %2532, %v1947_v21   ;;  %v1715_v19 = vld [vmem:[%s4674_s3 + $0x20] sm:$0xff] }
 0x2a5   :  { %1793 = vperm.xlu0 %2533, %v1771_v35  }
 0x2a6   :  { %v2541_v10 = vpop.eup %2540  ;;  %v1735_v50 = vadd.f32 1e-05, %v1695_v45 }
 0x2a7   :  { %v1634_v56 = vpop.xlane.xlu1 %1633  ;;  %v1772_v22 = vmul.f32 %v2541_v10, %v1712_v57 }
 0x2a8   :  { %2546 = vrsqrt.f32 %v1735_v50  ;;  %v1696_v40 = vmul.f32 0.0051020407, %v1634_v56  ;;  %v1716_v56 = vld [vmem:[%s4674_s3 + $0x28] sm:$0xff] }
 0x2a9   :  { %1798 = vperm.xlu1 %2532, %v1772_v22  }
 0x2aa   :  { %v2543_v58 = vpop.eup %2542  ;;  %v1736_v0 = vadd.f32 1e-05, %v1696_v40 }
 0x2ab   :  { %v1638_v29 = vpop.xlane.xlu0 %1637  ;;  %v1773_v61 = vmul.f32 %v2543_v58, %v1713_v24 }
 0x2ac   :  { %2548 = vrsqrt.f32 %v1736_v0  ;;  %v1697_v1 = vmul.f32 0.0051020407, %v1638_v29  ;;  %v1717_v29 = vld [vmem:[%s4674_s3 + $0x30] sm:$0xff] }
 0x2ad   :  { %1803 = vperm.xlu1 %2532, %v1773_v61  }
 0x2ae   :  { %v2545_v7 = vpop.eup %2544  ;;  %v1737_v11 = vadd.f32 1e-05, %v1697_v1 }
 0x2af   :  { %v1642_v21 = vpop.xlane.xlu1 %1641  ;;  %v1774_v31 = vmul.f32 %v2545_v7, %v1714_v38 }
 0x2b0   :  { %2550 = vrsqrt.f32 %v1737_v11  ;;  %v1698_v51 = vmul.f32 0.0051020407, %v1642_v21  ;;  %v1718_v21 = vld [vmem:[%s4674_s3 + $0x38] sm:$0xff] }
 0x2b1   :  { %1808 = vperm.xlu1 %2532, %v1774_v31  }
 0x2b2   :  { %v2547_v35 = vpop.eup %2546  ;;  %v1738_v45 = vadd.f32 1e-05, %v1698_v51 }
 0x2b3   :  { %v1646_v57 = vpop.xlane.xlu0 %1645  ;;  %v1775_v10 = vmul.f32 %v2547_v35, %v1715_v19 }
 0x2b4   :  { %2552 = vrsqrt.f32 %v1738_v45  ;;  %v1699_v50 = vmul.f32 0.0051020407, %v1646_v57  ;;  %v1719_v57 = vld [vmem:[%s4674_s3 + $0x40] sm:$0xff] }
 0x2b5   :  { %1813 = vperm.xlu1 %2532, %v1775_v10  }
 0x2b6   :  { %v2549_v22 = vpop.eup %2548  ;;  %v1739_v40 = vadd.f32 1e-05, %v1699_v50 }
 0x2b7   :  { %v1650_v24 = vpop.xlane.xlu1 %1649  ;;  %v1776_v58 = vmul.f32 %v2549_v22, %v1716_v56 }
 0x2b8   :  { %2554 = vrsqrt.f32 %v1739_v40  ;;  %v1700_v0 = vmul.f32 0.0051020407, %v1650_v24  ;;  %v1720_v24 = vld [vmem:[%s4674_s3 + $0x48] sm:$0xff] }
 0x2b9   :  { %1818 = vperm.xlu1 %2532, %v1776_v58  }
 0x2ba   :  { %v2551_v61 = vpop.eup %2550  ;;  %v1740_v1 = vadd.f32 1e-05, %v1700_v0 }
 0x2bb   :  { %v1654_v38 = vpop.xlane.xlu0 %1653  ;;  %v1777_v7 = vmul.f32 %v2551_v61, %v1717_v29 }
 0x2bc   :  { %2556 = vrsqrt.f32 %v1740_v1  ;;  %v1701_v11 = vmul.f32 0.0051020407, %v1654_v38  ;;  %v1721_v38 = vld [vmem:[%s4674_s3 + $0x50] sm:$0xff] }
 0x2bd   :  { %1823 = vperm.xlu1 %2532, %v1777_v7  }
 0x2be   :  { %v2553_v31 = vpop.eup %2552  ;;  %v1741_v51 = vadd.f32 1e-05, %v1701_v11 }
 0x2bf   :  { %v1658_v19 = vpop.xlane.xlu1 %1657  ;;  %v1778_v35 = vmul.f32 %v2553_v31, %v1718_v21 }
 0x2c0   :  { %2558 = vrsqrt.f32 %v1741_v51  ;;  %v1702_v45 = vmul.f32 0.0051020407, %v1658_v19  ;;  %v1722_v19 = vld [vmem:[%s4674_s3 + $0x58] sm:$0xff] }
 0x2c1   :  { %1828 = vperm.xlu1 %2532, %v1778_v35  }
 0x2c2   :  { %v2555_v10 = vpop.eup %2554  ;;  %v1742_v50 = vadd.f32 1e-05, %v1702_v45 }
 0x2c3   :  { %v1662_v56 = vpop.xlane.xlu0 %1661  ;;  %v1779_v22 = vmul.f32 %v2555_v10, %v1719_v57 }
 0x2c4   :  { %2560 = vrsqrt.f32 %v1742_v50  ;;  %v1703_v40 = vmul.f32 0.0051020407, %v1662_v56  ;;  %v1723_v56 = vld [vmem:[%s4674_s3 + $0x60] sm:$0xff] }
 0x2c5   :  { %1833 = vperm.xlu1 %2532, %v1779_v22  }
 0x2c6   :  { %v2557_v58 = vpop.eup %2556  ;;  %v1743_v0 = vadd.f32 1e-05, %v1703_v40 }
 0x2c7   :  { %v1666_v29 = vpop.xlane.xlu1 %1665  ;;  %v1780_v61 = vmul.f32 %v2557_v58, %v1720_v24 }
 0x2c8   :  { %2562 = vrsqrt.f32 %v1743_v0  ;;  %v1704_v1 = vmul.f32 0.0051020407, %v1666_v29  ;;  %v1724_v29 = vld [vmem:[%s4674_s3 + $0x68] sm:$0xff] }
 0x2c9   :  { %1838 = vperm.xlu0 %2533, %v1780_v61  }
 0x2ca   :  { %v2559_v7 = vpop.eup %2558  ;;  %v1744_v11 = vadd.f32 1e-05, %v1704_v1 }
 0x2cb   :  { %v1670_v21 = vpop.xlane.xlu0 %1669  ;;  %v1781_v31 = vmul.f32 %v2559_v7, %v1721_v38 }
 0x2cc   :  { %2564 = vrsqrt.f32 %v1744_v11  ;;  %v1705_v51 = vmul.f32 0.0051020407, %v1670_v21  ;;  %v1725_v21 = vld [vmem:[%s4674_s3 + $0x70] sm:$0xff] }
 0x2cd   :  { %1843 = vperm.xlu1 %2532, %v1781_v31  }
 0x2ce   :  { %v2561_v35 = vpop.eup %2560  ;;  %v1745_v45 = vadd.f32 1e-05, %v1705_v51 }
 0x2cf   :  { %v1674_v57 = vpop.xlane.xlu1 %1673  ;;  %v1782_v10 = vmul.f32 %v2561_v35, %v1722_v19 }
 0x2d0   :  { %2566 = vrsqrt.f32 %v1745_v45  ;;  %v1706_v50 = vmul.f32 0.0051020407, %v1674_v57  ;;  %v1726_v57 = vld [vmem:[%s4674_s3 + $0x78] sm:$0xff] }
 0x2d1   :  { %1848 = vperm.xlu0 %2533, %v1782_v10  }
 0x2d2   :  { %v2563_v22 = vpop.eup %2562  ;;  %v1746_v40 = vadd.f32 1e-05, %v1706_v50 }
 0x2d3   :  { %v1678_v24 = vpop.xlane.xlu0 %1677  ;;  %v1783_v58 = vmul.f32 %v2563_v22, %v1723_v56  ;;  %v1727_v22 = vld [vmem:[%s4674_s3 + $0x80] sm:$0xff] }
 0x2d4   :  { %2568 = vrsqrt.f32 %v1746_v40  ;;  %v1707_v0 = vmul.f32 0.0051020407, %v1678_v24 }
 0x2d5   :  { %1853 = vperm.xlu1 %2532, %v1783_v58   ;;  %v1728_v58 = vld [vmem:[%s4674_s3 + $0x88] sm:$0xff] }
 0x2d6   :  { %v2565_v61 = vpop.eup %2564  ;;  %v1747_v1 = vadd.f32 1e-05, %v1707_v0 }
 0x2d7   :  { %v1682_v38 = vpop.xlane.xlu1 %1681  ;;  %v1784_v7 = vmul.f32 %v2565_v61, %v1724_v29  ;;  %v1729_v61 = vld [vmem:[%s4674_s3 + $0x90] sm:$0xff] }
 0x2d8   :  { %2570 = vrsqrt.f32 %v1747_v1  ;;  %v1708_v11 = vmul.f32 0.0051020407, %v1682_v38 }
 0x2d9   :  { %1858 = vperm.xlu0 %2533, %v1784_v7   ;;  %v1949_v7 = vld [vmem:[%s4675_s4 + $0x90] sm:$0xff] }
 0x2da   :  { %v2567_v31 = vpop.eup %2566  ;;  %v1748_v51 = vadd.f32 1e-05, %v1708_v11 }
 0x2db   :  { %v1686_v19 = vpop.xlane.xlu0 %1685  ;;  %v1785_v35 = vmul.f32 %v2567_v31, %v1725_v21  ;;  %v1974_v31 = vpop.permute.xlu1 %1973 }
 0x2dc   :  { %2572 = vrsqrt.f32 %v1748_v51  ;;  %v1709_v45 = vmul.f32 0.0051020407, %v1686_v19 }
 0x2dd   :  { %1863 = vperm.xlu1 %2532, %v1785_v35  }
 0x2de   :  { %v2569_v10 = vpop.eup %2568  ;;  %v1749_v50 = vadd.f32 1e-05, %v1709_v45 }
 0x2df   :  { %v1786_v56 = vmul.f32 %v2569_v10, %v1726_v57  ;;  %v4539_v19 = vpop.permute.xlu1 %1983 }
 0x2e0   :  { %2574 = vrsqrt.f32 %v1749_v50 }
 0x2e1   :  { %1868 = vperm.xlu0 %2533, %v1786_v56  }
 0x2e2   :  { %v2571_v40 = vpop.eup %2570 }
 0x2e3   :  { %v1787_v24 = vmul.f32 %v2571_v40, %v1727_v22  ;;  %v1969_v11 = vpop.permute.xlu0 %1968  ;;  %v4543_v45 = vpop.permute.xlu1 %1993 }
 0x2e5   :  { %1873 = vperm.xlu1 %2532, %v1787_v24  }
 0x2e6   :  { %v2573_v0 = vpop.eup %2572 }
 0x2e7   :  { %v1788_v29 = vmul.f32 %v2573_v0, %v1728_v58  ;;  %v4535_v21 = vpop.permute.xlu0 %1978  ;;  %v4547_v10 = vpop.permute.xlu1 %2003 }
 0x2e9   :  { %1878 = vperm.xlu0 %2533, %v1788_v29  }
 0x2ea   :  { %v2575_v1 = vpop.eup %2574 }
 0x2eb   :  { %v1789_v38 = vmul.f32 %v2575_v1, %v1729_v61  ;;  %v4537_v51 = vpop.permute.xlu0 %1988  ;;  %v4551_v56 = vpop.permute.xlu1 %2013 }
 0x2ed   :  { %1883 = vperm.xlu1 %2532, %v1789_v38  }
 0x2ef   :  { %v4541_v35 = vpop.permute.xlu0 %1998  ;;  %v4555_v40 = vpop.permute.xlu1 %2023 }
 0x2f1   :  { %2043 = vperm.xlu1 %2532, %v1949_v7  }
 0x2f3   :  { %v4545_v57 = vpop.permute.xlu0 %2008 }
 0x2f7   :  { %v4549_v50 = vpop.permute.xlu0 %2018 }
 0x2fb   :  { %v4553_v22 = vpop.permute.xlu0 %2028 }
 0x2ff   :  { %v4557_v24 = vpop.permute.xlu0 %2038 }
 0x300   :  { %4686 = vst [vmem:[#allocation9_spill] sm:$0xff] %v4557_v24 }
 0x320   :  { %v1690_v58 = vpop.xlane.xlu1 %1689 }
 0x321   :  { %v1710_v0 = vmul.f32 0.0051020407, %v1690_v58 }
 0x323   :  { %v1750_v29 = vadd.f32 1e-05, %v1710_v0 }
 0x324   :  { %v1794_v61 = vpop.permute.xlu0 %1793  ;;  %v4559_v1 = vpop.permute.xlu1 %2033 }
 0x325   :  { %2576 = vrsqrt.f32 %v1750_v29  ;;  %v1891_v38 = vmul.f32 %v1794_v61, %v4205_v23  ;;  %v1892_v7 = vmul.f32 %v1794_v61, %v4208_v26 }
 0x327   :  { %v2051_v43 = vadd.f32 %v4210_v27, %v1891_v38  ;;  %v2052_v39 = vadd.f32 %v4210_v27, %v1892_v7  ;;  %v1730_v27 = vld [vmem:[%s4674_s3 + $0x98] sm:$0xff]  ;;  %s2603_s3 = smov [#allocation2]  }
 0x328   :  { %v1799_v34 = vpop.permute.xlu1 %1798 }
 0x329   :  { %2091 = vst [vmem:[#allocation2] sm:$0xff] %v2051_v43  ;;  %2092 = vst.msk [vmem:[#allocation2 + $0x8] sm:$0xff] %vm1430_vm1, %v2052_v39  ;;  %v1893_v13 = vmul.f32 %v1799_v34, %v4217_v47  ;;  %v1894_v58 = vmul.f32 %v1799_v34, %v4220_v49 }
 0x32b   :  { %v2053_v0 = vadd.f32 %v4467_v60, %v1893_v13  ;;  %v2054_v29 = vadd.f32 %v4467_v60, %v1894_v58 }
 0x32c   :  { %v1804_v24 = vpop.permute.xlu1 %1803 }
 0x32d   :  { %2093 = vst [vmem:[#allocation2 + $0x10] sm:$0xff] %v2053_v0  ;;  %2094 = vst.msk [vmem:[#allocation2 + $0x18] sm:$0xff] %vm1430_vm1, %v2054_v29  ;;  %v1895_v23 = vmul.f32 %v1804_v24, %v4228_v42  ;;  %v1896_v26 = vmul.f32 %v1804_v24, %v4231_v3  ;;  %v1950_v24 = vld [vmem:[%s4675_s4 + $0x98] sm:$0xff]  ;;  %s2136_s4 = sshll.u32 %s2603_s3, 4  ;;  %s2137_s4 = int_to_ptr.vmem [resolvable:$true] %s2136_s4 }
 0x32e   :  { %s2578_s11 = scalar_lea.vmem %s2137_s4, 5120  ;;  %p2583_p1 = scmp.lt.s32.totalorder %s2137_s4, %s2137_s4 }
 0x32f   :  { %v2577_v43 = vpop.eup %2576  ;;  %v2055_v47 = vadd.f32 %v4454_v15, %v1895_v23  ;;  %v2056_v49 = vadd.f32 %v4454_v15, %v1896_v26  ;;  %p2579_p0 = scmp.ne.s32.totalorder %s2137_s4, %s2578_s11  ;;  %p2584_p2 = scmp.lt.s32.totalorder %s2578_s11, %s2578_s11 }
 0x330   :  { %v1809_v13 = vpop.permute.xlu1 %1808  ;;  %v1790_v34 = vmul.f32 %v2577_v43, %v1730_v27 }
 0x331   :  { %2095 = vst [vmem:[#allocation2 + $0x20] sm:$0xff] %v2055_v47  ;;  %2096 = vst.msk [vmem:[#allocation2 + $0x28] sm:$0xff] %vm1430_vm1, %v2056_v49  ;;  %v1897_v39 = vmul.f32 %v1809_v13, %v4239_v12  ;;  %v1898_v42 = vmul.f32 %v1809_v13, %v4242_v4  ;;  %p2585_p3 = por %p2584_p2, %p2583_p1 }
 0x332   :  { %1888 = vperm.xlu0 %2533, %v1790_v34  }
 0x333   :  { %v2057_v3 = vadd.f32 %v1969_v11, %v1897_v39  ;;  %v2058_v60 = vadd.f32 %v1969_v11, %v1898_v42  ;;  %p2586_p4 = pnand %p2585_p3, %p2579_p0 }
 0x334   :  { %v1814_v61 = vpop.permute.xlu1 %1813 }
 0x335   :  { %2097 = vst [vmem:[#allocation2 + $0x30] sm:$0xff] %v2057_v3  ;;  %2098 = vst.msk [vmem:[#allocation2 + $0x38] sm:$0xff] %vm1430_vm1, %v2058_v60  ;;  %v1899_v15 = vmul.f32 %v1814_v61, %v4250_v36  ;;  %v1900_v38 = vmul.f32 %v1814_v61, %v4253_v30 }
 0x336   :  { %2048 = vperm.xlu0 %2533, %v1950_v24  }
 0x337   :  { %v2059_v7 = vadd.f32 %v1974_v31, %v1899_v15  ;;  %v2060_v12 = vadd.f32 %v1974_v31, %v1900_v38 }
 0x338   :  { %v1819_v58 = vpop.permute.xlu1 %1818 }
 0x339   :  { %2099 = vst [vmem:[#allocation2 + $0x40] sm:$0xff] %v2059_v7  ;;  %2100 = vst.msk [vmem:[#allocation2 + $0x48] sm:$0xff] %vm1430_vm1, %v2060_v12  ;;  %v1901_v4 = vmul.f32 %v1819_v58, %v4261_v53  ;;  %v1902_v11 = vmul.f32 %v1819_v58, %v4264_v16 }
 0x33b   :  { %v2061_v0 = vadd.f32 %v4535_v21, %v1901_v4  ;;  %v2062_v29 = vadd.f32 %v4535_v21, %v1902_v11 }
 0x33c   :  { %v1824_v23 = vpop.permute.xlu1 %1823 }
 0x33d   :  { %2101 = vst [vmem:[#allocation2 + $0x50] sm:$0xff] %v2061_v0  ;;  %2102 = vst.msk [vmem:[#allocation2 + $0x58] sm:$0xff] %vm1430_vm1, %v2062_v29  ;;  %v1903_v36 = vmul.f32 %v1824_v23, %v4272_v6  ;;  %v1904_v30 = vmul.f32 %v1824_v23, %v4275_v25 }
 0x33f   :  { %v2063_v31 = vadd.f32 %v4539_v19, %v1903_v36  ;;  %v2064_v26 = vadd.f32 %v4539_v19, %v1904_v30 }
 0x340   :  { %v1829_v27 = vpop.permute.xlu1 %1828 }
 0x341   :  { %2103 = vst [vmem:[#allocation2 + $0x60] sm:$0xff] %v2063_v31  ;;  %2104 = vst.msk [vmem:[#allocation2 + $0x68] sm:$0xff] %vm1430_vm1, %v2064_v26  ;;  %v1905_v53 = vmul.f32 %v1829_v27, %v4283_v18  ;;  %v1906_v16 = vmul.f32 %v1829_v27, %v4286_v37  ;;  %v4689_v31 = vld [vmem:[#allocation6_spill] sm:$0xff] }
 0x343   :  { %v2065_v21 = vadd.f32 %v4537_v51, %v1905_v53  ;;  %v2066_v43 = vadd.f32 %v4537_v51, %v1906_v16 }
 0x344   :  { %v1834_v47 = vpop.permute.xlu1 %1833 }
 0x345   :  { %2105 = vst [vmem:[#allocation2 + $0x70] sm:$0xff] %v2065_v21  ;;  %2106 = vst.msk [vmem:[#allocation2 + $0x78] sm:$0xff] %vm1430_vm1, %v2066_v43  ;;  %v1907_v6 = vmul.f32 %v1834_v47, %v4294_v54  ;;  %v1908_v25 = vmul.f32 %v1834_v47, %v4297_v48  ;;  %v4691_v21 = vld [vmem:[#allocation7_spill] sm:$0xff] }
 0x347   :  { %v2067_v19 = vadd.f32 %v4543_v45, %v1907_v6  ;;  %v2068_v49 = vadd.f32 %v4543_v45, %v1908_v25 }
 0x348   :  { %v1839_v13 = vpop.permute.xlu0 %1838 }
 0x349   :  { %2107 = vst [vmem:[#allocation2 + $0x80] sm:$0xff] %v2067_v19  ;;  %2108 = vst.msk [vmem:[#allocation2 + $0x88] sm:$0xff] %vm1430_vm1, %v2068_v49  ;;  %v1909_v18 = vmul.f32 %v1839_v13, %v4305_v63  ;;  %v1910_v37 = vmul.f32 %v1839_v13, %v4308_v41 }
 0x34b   :  { %v2069_v51 = vadd.f32 %v4541_v35, %v1909_v18  ;;  %v2070_v34 = vadd.f32 %v4541_v35, %v1910_v37 }
 0x34c   :  { %v1844_v39 = vpop.permute.xlu1 %1843 }
 0x34d   :  { %2109 = vst [vmem:[#allocation2 + $0x90] sm:$0xff] %v2069_v51  ;;  %2110 = vst.msk [vmem:[#allocation2 + $0x98] sm:$0xff] %vm1430_vm1, %v2070_v34  ;;  %v1911_v54 = vmul.f32 %v1844_v39, %v4316_v8  ;;  %v1912_v48 = vmul.f32 %v1844_v39, %v4319_v62 }
 0x34f   :  { %v2071_v45 = vadd.f32 %v4547_v10, %v1911_v54  ;;  %v2072_v42 = vadd.f32 %v4547_v10, %v1912_v48 }
 0x350   :  { %v1849_v3 = vpop.permute.xlu0 %1848 }
 0x351   :  { %2111 = vst [vmem:[#allocation2 + $0xa0] sm:$0xff] %v2071_v45  ;;  %2112 = vst.msk [vmem:[#allocation2 + $0xa8] sm:$0xff] %vm1430_vm1, %v2072_v42  ;;  %v1913_v63 = vmul.f32 %v1849_v3, %v4327_v14  ;;  %v1914_v41 = vmul.f32 %v1849_v3, %v4330_v9 }
 0x353   :  { %v2073_v35 = vadd.f32 %v4545_v57, %v1913_v63  ;;  %v2074_v60 = vadd.f32 %v4545_v57, %v1914_v41 }
 0x354   :  { %v1854_v24 = vpop.permute.xlu1 %1853 }
 0x355   :  { %2113 = vst [vmem:[#allocation2 + $0xb0] sm:$0xff] %v2073_v35  ;;  %2114 = vst.msk [vmem:[#allocation2 + $0xb8] sm:$0xff] %vm1430_vm1, %v2074_v60  ;;  %v1915_v8 = vmul.f32 %v1854_v24, %v4338_v20  ;;  %v1916_v62 = vmul.f32 %v1854_v24, %v4341_v17 }
 0x357   :  { %v2075_v10 = vadd.f32 %v4551_v56, %v1915_v8  ;;  %v2076_v61 = vadd.f32 %v4551_v56, %v1916_v62 }
 0x358   :  { %v1859_v15 = vpop.permute.xlu0 %1858 }
 0x359   :  { %2115 = vst [vmem:[#allocation2 + $0xc0] sm:$0xff] %v2075_v10  ;;  %2116 = vst.msk [vmem:[#allocation2 + $0xc8] sm:$0xff] %vm1430_vm1, %v2076_v61  ;;  %v1917_v14 = vmul.f32 %v1859_v15, %v4349_v33  ;;  %v1918_v9 = vmul.f32 %v1859_v15, %v4352_v28 }
 0x35b   :  { %v2077_v57 = vadd.f32 %v4549_v50, %v1917_v14  ;;  %v2078_v38 = vadd.f32 %v4549_v50, %v1918_v9 }
 0x35c   :  { %v1864_v7 = vpop.permute.xlu1 %1863 }
 0x35d   :  { %2117 = vst [vmem:[#allocation2 + $0xd0] sm:$0xff] %v2077_v57  ;;  %2118 = vst.msk [vmem:[#allocation2 + $0xd8] sm:$0xff] %vm1430_vm1, %v2078_v38  ;;  %v1919_v20 = vmul.f32 %v1864_v7, %v4360_v44  ;;  %v1920_v17 = vmul.f32 %v1864_v7, %v4363_v46 }
 0x35f   :  { %v2079_v56 = vadd.f32 %v4555_v40, %v1919_v20  ;;  %v2080_v12 = vadd.f32 %v4555_v40, %v1920_v17 }
 0x360   :  { %v1869_v58 = vpop.permute.xlu0 %1868 }
 0x361   :  { %2119 = vst [vmem:[#allocation2 + $0xe0] sm:$0xff] %v2079_v56  ;;  %2120 = vst.msk [vmem:[#allocation2 + $0xe8] sm:$0xff] %vm1430_vm1, %v2080_v12  ;;  %v1921_v33 = vmul.f32 %v1869_v58, %v4371_v52  ;;  %v1922_v28 = vmul.f32 %v1869_v58, %v4374_v55 }
 0x363   :  { %v2081_v50 = vadd.f32 %v4553_v22, %v1921_v33  ;;  %v2082_v4 = vadd.f32 %v4553_v22, %v1922_v28  ;;  %v4687_v22 = vld [vmem:[#allocation9_spill] sm:$0xff] }
 0x364   :  { %v1874_v11 = vpop.permute.xlu1 %1873 }
 0x365   :  { %2121 = vst [vmem:[#allocation2 + $0xf0] sm:$0xff] %v2081_v50  ;;  %2122 = vst.msk [vmem:[#allocation2 + $0xf8] sm:$0xff] %vm1430_vm1, %v2082_v4  ;;  %v1923_v44 = vmul.f32 %v1874_v11, %v4382_v59  ;;  %v1924_v46 = vmul.f32 %v1874_v11, %v4385_v2  ;;  %v4688_v59 = vld [vmem:[#allocation5_spill] sm:$0xff] }
 0x367   :  { %v2083_v40 = vadd.f32 %v4559_v1, %v1923_v44  ;;  %v2084_v0 = vadd.f32 %v4559_v1, %v1924_v46 }
 0x368   :  { %v1879_v29 = vpop.permute.xlu0 %1878 }
 0x369   :  { %2123 = vst [vmem:[#allocation2 + $0x100] sm:$0xff] %v2083_v40  ;;  %2124 = vst.msk [vmem:[#allocation2 + $0x108] sm:$0xff] %vm1430_vm1, %v2084_v0  ;;  %v1925_v52 = vmul.f32 %v1879_v29, %v4393_v5  ;;  %v1926_v55 = vmul.f32 %v1879_v29, %v4396_v32  ;;  %v4690_v32 = vld [vmem:[#allocation8_spill] sm:$0xff] }
 0x36b   :  { %v2085_v23 = vadd.f32 %v4687_v22, %v1925_v52  ;;  %v2086_v36 = vadd.f32 %v4687_v22, %v1926_v55 }
 0x36c   :  { %v1884_v30 = vpop.permute.xlu1 %1883 }
 0x36d   :  { %2125 = vst [vmem:[#allocation2 + $0x110] sm:$0xff] %v2085_v23  ;;  %2126 = vst.msk [vmem:[#allocation2 + $0x118] sm:$0xff] %vm1430_vm1, %v2086_v36  ;;  %v1927_v2 = vmul.f32 %v1884_v30, %v4688_v59  ;;  %v1928_v1 = vmul.f32 %v1884_v30, %v4689_v31 }
 0x370   :  { %v2044_v26 = vpop.permute.xlu1 %2043 }
 0x371   :  { %v2087_v27 = vadd.f32 %v2044_v26, %v1927_v2  ;;  %v2088_v53 = vadd.f32 %v2044_v26, %v1928_v1 }
 0x373   :  { %2127 = vst [vmem:[#allocation2 + $0x120] sm:$0xff] %v2087_v27  ;;  %2128 = vst.msk [vmem:[#allocation2 + $0x128] sm:$0xff] %vm1430_vm1, %v2088_v53 }
 0x3b1   :  { %v1889_v5 = vpop.permute.xlu0 %1888 }
 0x3b2   :  { %v1929_v16 = vmul.f32 %v1889_v5, %v4690_v32  ;;  %v1930_v43 = vmul.f32 %v1889_v5, %v4691_v21 }
 0x3b5   :  { %v2049_v47 = vpop.permute.xlu0 %2048 }
 0x3b6   :  { %v2089_v6 = vadd.f32 %v2049_v47, %v1929_v16  ;;  %v2090_v25 = vadd.f32 %v2049_v47, %v1930_v43 }
 0x3b8   :  { %2129 = vst [vmem:[#allocation2 + $0x130] sm:$0xff] %v2089_v6  ;;  %2130 = vst.msk [vmem:[#allocation2 + $0x138] sm:$0xff] %vm1430_vm1, %v2090_v25 }
 0x3b9   :  { %2589 = shalt.err (!%p2586_p4)
}
 0x3ba   :  { %s2590_s14 = scalar_lea.hbm %s4676_s5, 5120 }
 0x3bb   :  { %p2591_p5 = scmp.ne.s32.totalorder %s4676_s5, %s2590_s14  ;;  %p2594_p6 = scmp.lt.u32.totalorder %s2590_s14, %s4676_s5 }
 0x3bd   :  { %p2596_p7 = pnand %p2594_p6, %p2591_p5 }
 0x3bf   :  { %2599 = shalt.err (!%p2596_p7)
}
 0x3c0   :  { %s2604_s18 = smov 256   ;;  %s2605_s19 = smov 16  }
 0x3c1   :  { %2142 = dma.vmem_to_hbm [thread:$0]  %s2137_s4, 5120, %s4676_s5, [#allocation3], %s2604_s18, %s2604_s18, %s2605_s19  }
 0x3c2   :  { %2600 = dma.done.wait [#allocation3], 5120  }
 0x3c3   :  { %2601 = vsyncadd [#allocation3], 4294962176 }
 0x3c4   :  { %2146 = vsyncpa [#allocation3], 1 }

</bundles_post_ra>
